<compile_context>
chip_gen: v7x
topology: tpu7x:2x2x1
jax: 0.10.0
libtpu: 0.0.40
codegen_flags: <defaults>
</compile_context>

<pallas_src>
import functools

import jax
import jax.numpy as jnp
from jax import lax
from jax.experimental import pallas as pl
from jax.experimental.pallas import tpu as pltpu


# --------------------------------------------------------------------------------------
# Fused kernel: parallel prologue (C = X @ W1x + b1) + serial T-step recurrence
# --------------------------------------------------------------------------------------
def _bigram_fused_kernel(x_ref, w1x_ref, w1l_ref, w2_ref, b1_ref, b2_ref,
                         logits_ref, preds_ref, c_ref, *, lane_dense):
    T, TB, H = c_ref.shape
    L = w2_ref.shape[1]
    unroll = max(1, min(8, T))

    # Hoisted loop invariants (JAX does not CSE broadcast_in_dim; load/build them once).
    w1x = w1x_ref[...]                                       # (D, H)
    b1 = b1_ref[...]                                         # (1, H)
    w2 = w2_ref[...]                                         # (H, L)
    b2 = b2_ref[...]                                         # (1, L)
    lane_ids = lax.broadcasted_iota(jnp.int32, (TB, L), 1)   # (TB, L)
    # Keep the label-embedding rows at (1, H): trivial vreg live set (review item);
    # broadcasting to (TB, H) happens inside the select, per step.
    if L <= 8:
        w1l_rows = [w1l_ref[l:l + 1, :] for l in range(L)]
        w1l = None
    else:
        w1l_rows = None
        w1l = w1l_ref[...]                                   # (L, H) for the MXU path

    # ---- Parallel prologue: recurrence-independent term, off the serial chain -------
    def _fill_c(t, carry):
        c_ref[t] = jnp.dot(x_ref[t], w1x, preferred_element_type=jnp.float32) + b1
        return carry

    lax.fori_loop(0, T, _fill_c, 0, unroll=unroll)

    # ---- Serial recurrence: only `pred` is carried between steps ---------------------
    def _step(t, prev_pred):
        # Label contribution of the previous prediction (zeros at t == 0 via pred == -1).
        if L <= 8:
            contrib = jnp.zeros((TB, H), jnp.float32)
            for l in range(L):
                sel = (prev_pred == l).astype(jnp.float32)           # (TB, 1)
                contrib = contrib + sel * w1l_rows[l]                # (TB,1)*(1,H)->(TB,H)
        else:
            oh_prev = (lane_ids == prev_pred).astype(jnp.float32)    # (TB, L)
            contrib = jnp.dot(oh_prev, w1l, preferred_element_type=jnp.float32)

        h = jnp.tanh(c_ref[t] + contrib)                                   # (TB, H)
        logit = jnp.dot(h, w2, preferred_element_type=jnp.float32) + b2    # (TB, L)

        # argmax with first-maximal-index tie-break (matches torch.argmax / jnp.argmax).
        m = jnp.max(logit, axis=-1, keepdims=True)
        pred = jnp.min(jnp.where(logit == m, lane_ids, L),
                       axis=-1, keepdims=True)                             # (TB, 1) int32

        # Stores do not feed the next step -> off the serial dependence chain.
        if lane_dense:
            logits_ref[t] = logit.T          # (L, TB): batch on lanes, unmasked stores
        else:
            logits_ref[t] = logit            # (TB, L)
        preds_ref[t] = pred
        return pred

    lax.fori_loop(0, T, _step, jnp.full((TB, 1), -1, jnp.int32), unroll=unroll)


# --------------------------------------------------------------------------------------
# Wrapper
# --------------------------------------------------------------------------------------
def _pick_batch_tile(batch):
    # One tile when B <= 128; otherwise 128-wide tiles: satisfies the (..., L, TB)
    # lane-dense block constraint (TB % 128 == 0 or TB == B), bounds VMEM, and lets the
    # two v7x TensorCores split the batch.
    if batch > 128 and batch % 128 == 0:
        return 128
    return batch


def bigram_seg_forward(X, lengths, params, label_emb_dim, lane_dense=None):
    """X: [B, T, D] float32.  `lengths` is unused, exactly as in the PyTorch forward."""
    del lengths
    B, T, D = X.shape
    W1, b1, W2, b2 = params["W1"], params["b1"], params["W2"], params["b2"]
    H = W1.shape[1]
    L = label_emb_dim
    assert W1.shape[0] == D + L and W2.shape[1] == L

    W1x = W1[:D]          # (D, H)  feature part of the first Linear
    W1l = W1[D:]          # (L, H)  label-embedding part of the first Linear

    if lane_dense is None:
        lane_dense = B >= 64     # batch on the lane dim only pays off at realistic B

    TB = _pick_batch_tile(B)
    grid = (B // TB,)

    # Time-major X so the kernel indexes the (cheap) leading axis per step.
    x_tm = jnp.transpose(X, (1, 0, 2)).astype(jnp.float32)   # (T, B, D)

    if lane_dense:
        logits_shape = jax.ShapeDtypeStruct((T, L, B), jnp.float32)
        logits_spec = pl.BlockSpec((T, L, TB), lambda b: (0, 0, b))
    else:
        logits_shape = jax.ShapeDtypeStruct((T, B, L), jnp.float32)
        logits_spec = pl.BlockSpec((T, TB, L), lambda b: (0, b, 0))

    # Rough per-step VMEM working set (double-buffered I/O + resident C scratch);
    # only raise the scoped limit when the defaults would actually be tight.
    est_bytes = 4 * (2 * T * TB * D + 2 * T * TB * (L + 1) + T * TB * H
                     + (D + L) * H + H * L + H + L)
    vmem_limit = int(min(2 * est_bytes, 128 * 1024 * 1024)) \
        if est_bytes > 12 * 1024 * 1024 else None

    logits_raw, preds_raw = pl.pallas_call(
        functools.partial(_bigram_fused_kernel, lane_dense=lane_dense),
        out_shape=(logits_shape, jax.ShapeDtypeStruct((T, B, 1), jnp.int32)),
        grid=grid,
        in_specs=[
            pl.BlockSpec((T, TB, D), lambda b: (0, b, 0)),   # X, one batch tile
            pl.BlockSpec((D, H), lambda b: (0, 0)),          # W1x
            pl.BlockSpec((L, H), lambda b: (0, 0)),          # W1l
            pl.BlockSpec((H, L), lambda b: (0, 0)),          # W2
            pl.BlockSpec((1, H), lambda b: (0, 0)),          # b1
            pl.BlockSpec((1, L), lambda b: (0, 0)),          # b2
        ],
        out_specs=(logits_spec,
                   pl.BlockSpec((T, TB, 1), lambda b: (0, b, 0))),
        scratch_shapes=[pltpu.VMEM((T, TB, H), jnp.float32)],
        compiler_params=pltpu.CompilerParams(
            dimension_semantics=("parallel",),
            vmem_limit_bytes=vmem_limit),
    )(x_tm, W1x, W1l, W2, b1, b2)

    # Back to the PyTorch (B, T, ...) layout + fully parallel post-pass (review item:
    # probs / one_hots do not belong on the serial chain; plain XLA fuses this fine).
    if lane_dense:
        logits = jnp.transpose(logits_raw, (2, 0, 1))        # (T, L, B) -> (B, T, L)
    else:
        logits = jnp.transpose(logits_raw, (1, 0, 2))        # (T, B, L) -> (B, T, L)
    preds = jnp.transpose(preds_raw[..., 0], (1, 0))         # (B, T)
    probs = jax.nn.softmax(logits, axis=-1)
    one_hots = (preds[..., None] == jnp.arange(L, dtype=preds.dtype)).astype(jnp.int32)

    return {"logits": logits, "probs": probs, "preds": preds, "one_hots": one_hots}


# --------------------------------------------------------------------------------------
# Pure-JAX reference mirroring the PyTorch loop
# --------------------------------------------------------------------------------------
def bigram_seg_reference(X, params, label_emb_dim):
    B, T, D = X.shape
    W1, b1, W2, b2 = params["W1"], params["b1"], params["W2"], params["b2"]
    L = label_emb_dim
    prev = jnp.zeros((B, L), jnp.float32)
    logits, probs, preds, ohs = [], [], [], []
    for i in range(T):
        xin = jnp.concatenate([X[:, i], prev], axis=-1)
        h = jnp.tanh(xin @ W1 + b1)
        logit = h @ W2 + b2
        p = jax.nn.softmax(logit, axis=1)
        pred = jnp.argmax(logit, axis=1)
        oh = jax.nn.one_hot(pred, L, dtype=jnp.float32)
        logits.append(logit); probs.append(p); preds.append(pred); ohs.append(oh)
        prev = oh
    return {
        "logits": jnp.stack(logits, axis=1),
        "probs": jnp.stack(probs, axis=1),
        "preds": jnp.stack(preds, axis=1).astype(jnp.int32),
        "one_hots": jnp.stack(ohs, axis=1).astype(jnp.int32),
    }


def init_params(key, feat_dim, hidden_size, output_size, label_emb_dim):
    """Deterministic init mimicking nn.Linear defaults (uniform +/- 1/sqrt(fan_in))."""
    input_size = feat_dim + label_emb_dim
    k1, k2, k3, k4 = jax.random.split(key, 4)
    bnd1 = 1.0 / jnp.sqrt(input_size)
    bnd2 = 1.0 / jnp.sqrt(hidden_size)
    return {
        "W1": jax.random.uniform(k1, (input_size, hidden_size), jnp.float32, -bnd1, bnd1),
        "b1": jax.random.uniform(k2, (1, hidden_size), jnp.float32, -bnd1, bnd1),
        "W2": jax.random.uniform(k3, (hidden_size, output_size), jnp.float32, -bnd2, bnd2),
        "b2": jax.random.uniform(k4, (1, output_size), jnp.float32, -bnd2, bnd2),
    }


if __name__ == "__main__":
    B, T, D = 2, 8, 32          # batch, seq len, per-token feature dim
    H = 32                      # hidden_size
    L = 4                       # label_emb_dim == output_size
    # module's input_size = D + L (concat of features and previous one-hot)

    key = jax.random.PRNGKey(0)
    kx, kp = jax.random.split(key)
    X = jax.random.normal(kx, (B, T, D), jnp.float32)
    lengths = jnp.full((B,), T, jnp.int32)   # unused by the forward pass
    params = init_params(kp, D, H, L, L)

    out = bigram_seg_forward(X, lengths, params, L)
    out = jax.tree_util.tree_map(jax.block_until_ready, out)

    ref = bigram_seg_reference(X, params, L)
    assert jnp.allclose(out["logits"], ref["logits"], atol=1e-5, rtol=1e-5)
    assert jnp.allclose(out["probs"], ref["probs"], atol=1e-5, rtol=1e-5)
    assert jnp.array_equal(out["preds"], ref["preds"])
    assert jnp.array_equal(out["one_hots"], ref["one_hots"])

    print("KERNEL_OK")
</pallas_src>

<mosaic_0001>
module attributes {stable_mosaic.version = 11 : i64} {
  func.func @_bigram_fused_kernel(%arg0: i32, %arg1: memref<8x2x32xf32, #tpu.memory_space<vmem>>, %arg2: memref<32x32xf32, #tpu.memory_space<vmem>>, %arg3: memref<4x32xf32, #tpu.memory_space<vmem>>, %arg4: memref<32x4xf32, #tpu.memory_space<vmem>>, %arg5: memref<1x32xf32, #tpu.memory_space<vmem>>, %arg6: memref<1x4xf32, #tpu.memory_space<vmem>>, %arg7: memref<8x2x4xf32, #tpu.memory_space<vmem>>, %arg8: memref<8x2x1xi32, #tpu.memory_space<vmem>>, %arg9: memref<8x2x32xf32, #tpu.memory_space<vmem>>) attributes {dimension_semantics = [#tpu.dimension_semantics<parallel>], iteration_bounds = array<i64: 1>, scalar_prefetch = 0 : i64, scratch_operands = 1 : i64, tpu.core_type = #tpu.core_type<tc>, window_params = [{transform_indices = @transform_0, window_bounds = array<i64: 8, 2, 32>}, {pipeline_mode = #tpu.pipeline_mode<synchronous>, transform_indices = @transform_1, window_bounds = array<i64: 32, 32>}, {pipeline_mode = #tpu.pipeline_mode<synchronous>, transform_indices = @transform_2, window_bounds = array<i64: 4, 32>}, {pipeline_mode = #tpu.pipeline_mode<synchronous>, transform_indices = @transform_3, window_bounds = array<i64: 32, 4>}, {pipeline_mode = #tpu.pipeline_mode<synchronous>, transform_indices = @transform_4, window_bounds = array<i64: 1, 32>}, {pipeline_mode = #tpu.pipeline_mode<synchronous>, transform_indices = @transform_5, window_bounds = array<i64: 1, 4>}, {transform_indices = @transform_6, window_bounds = array<i64: 8, 2, 4>}, {transform_indices = @transform_7, window_bounds = array<i64: 8, 2, 1>}]} {
    %c0 = arith.constant 0 : index
    %c0_0 = arith.constant 0 : index
    %0 = vector.load %arg2[%c0, %c0_0] : memref<32x32xf32, #tpu.memory_space<vmem>>, vector<32x32xf32>
    %c0_1 = arith.constant 0 : index
    %c0_2 = arith.constant 0 : index
    %1 = vector.load %arg5[%c0_1, %c0_2] : memref<1x32xf32, #tpu.memory_space<vmem>>, vector<1x32xf32>
    %c0_3 = arith.constant 0 : index
    %c0_4 = arith.constant 0 : index
    %2 = vector.load %arg4[%c0_3, %c0_4] : memref<32x4xf32, #tpu.memory_space<vmem>>, vector<32x4xf32>
    %c0_5 = arith.constant 0 : index
    %c0_6 = arith.constant 0 : index
    %3 = vector.load %arg6[%c0_5, %c0_6] : memref<1x4xf32, #tpu.memory_space<vmem>>, vector<1x4xf32>
    %4 = tpu.iota {dimensions = array<i32: 1>} : vector<2x4xi32>
    %c0_7 = arith.constant 0 : index
    %c0_8 = arith.constant 0 : index
    %5 = vector.load %arg3[%c0_7, %c0_8] : memref<4x32xf32, #tpu.memory_space<vmem>>, vector<1x32xf32>
    %c1 = arith.constant 1 : index
    %c0_9 = arith.constant 0 : index
    %6 = vector.load %arg3[%c1, %c0_9] : memref<4x32xf32, #tpu.memory_space<vmem>>, vector<1x32xf32>
    %c2 = arith.constant 2 : index
    %c0_10 = arith.constant 0 : index
    %7 = vector.load %arg3[%c2, %c0_10] : memref<4x32xf32, #tpu.memory_space<vmem>>, vector<1x32xf32>
    %c3 = arith.constant 3 : index
    %c0_11 = arith.constant 0 : index
    %8 = vector.load %arg3[%c3, %c0_11] : memref<4x32xf32, #tpu.memory_space<vmem>>, vector<1x32xf32>
    %c0_i32 = arith.constant 0 : i32
    %9 = arith.index_cast %c0_i32 : i32 to index
    %c0_12 = arith.constant 0 : index
    %c0_13 = arith.constant 0 : index
    %10 = vector.load %arg1[%9, %c0_12, %c0_13] : memref<8x2x32xf32, #tpu.memory_space<vmem>>, vector<1x2x32xf32>
    %11 = vector.shape_cast %10 : vector<1x2x32xf32> to vector<2x32xf32>
    %cst = arith.constant dense<0.000000e+00> : vector<2x32xf32>
    %12 = tpu.matmul %11, %0, %cst {dimension_numbers = #tpu.dot_dimension_numbers<[1], [0], [0], [1], [0, 0, 1, 1], [], []>} : vector<2x32xf32>, vector<32x32xf32>, vector<2x32xf32> -> vector<2x32xf32>
    %13 = vector.broadcast %1 : vector<1x32xf32> to vector<2x32xf32>
    %14 = arith.addf %12, %13 : vector<2x32xf32>
    %15 = arith.index_cast %c0_i32 : i32 to index
    %c0_14 = arith.constant 0 : index
    %c0_15 = arith.constant 0 : index
    %16 = vector.load %arg9[%15, %c0_14, %c0_15] : memref<8x2x32xf32, #tpu.memory_space<vmem>>, vector<1x2x32xf32>
    %17 = vector.shape_cast %16 : vector<1x2x32xf32> to vector<2x32xf32>
    %18 = vector.shape_cast %14 : vector<2x32xf32> to vector<1x2x32xf32>
    tpu.vector_store %arg9[%15, %c0_14, %c0_15], %18 {strides = array<i32>} : memref<8x2x32xf32, #tpu.memory_space<vmem>>, vector<1x2x32xf32>,
    %c1_i32 = arith.constant 1 : i32
    %19 = arith.index_cast %c1_i32 : i32 to index
    %c0_16 = arith.constant 0 : index
    %c0_17 = arith.constant 0 : index
    %20 = vector.load %arg1[%19, %c0_16, %c0_17] : memref<8x2x32xf32, #tpu.memory_space<vmem>>, vector<1x2x32xf32>
    %21 = vector.shape_cast %20 : vector<1x2x32xf32> to vector<2x32xf32>
    %cst_18 = arith.constant dense<0.000000e+00> : vector<2x32xf32>
    %22 = tpu.matmul %21, %0, %cst_18 {dimension_numbers = #tpu.dot_dimension_numbers<[1], [0], [0], [1], [0, 0, 1, 1], [], []>} : vector<2x32xf32>, vector<32x32xf32>, vector<2x32xf32> -> vector<2x32xf32>
    %23 = vector.broadcast %1 : vector<1x32xf32> to vector<2x32xf32>
    %24 = arith.addf %22, %23 : vector<2x32xf32>
    %25 = arith.index_cast %c1_i32 : i32 to index
    %c0_19 = arith.constant 0 : index
    %c0_20 = arith.constant 0 : index
    %26 = vector.load %arg9[%25, %c0_19, %c0_20] : memref<8x2x32xf32, #tpu.memory_space<vmem>>, vector<1x2x32xf32>
    %27 = vector.shape_cast %26 : vector<1x2x32xf32> to vector<2x32xf32>
    %28 = vector.shape_cast %24 : vector<2x32xf32> to vector<1x2x32xf32>
    tpu.vector_store %arg9[%25, %c0_19, %c0_20], %28 {strides = array<i32>} : memref<8x2x32xf32, #tpu.memory_space<vmem>>, vector<1x2x32xf32>,
    %c2_i32 = arith.constant 2 : i32
    %29 = arith.index_cast %c2_i32 : i32 to index
    %c0_21 = arith.constant 0 : index
    %c0_22 = arith.constant 0 : index
    %30 = vector.load %arg1[%29, %c0_21, %c0_22] : memref<8x2x32xf32, #tpu.memory_space<vmem>>, vector<1x2x32xf32>
    %31 = vector.shape_cast %30 : vector<1x2x32xf32> to vector<2x32xf32>
    %cst_23 = arith.constant dense<0.000000e+00> : vector<2x32xf32>
    %32 = tpu.matmul %31, %0, %cst_23 {dimension_numbers = #tpu.dot_dimension_numbers<[1], [0], [0], [1], [0, 0, 1, 1], [], []>} : vector<2x32xf32>, vector<32x32xf32>, vector<2x32xf32> -> vector<2x32xf32>
    %33 = vector.broadcast %1 : vector<1x32xf32> to vector<2x32xf32>
    %34 = arith.addf %32, %33 : vector<2x32xf32>
    %35 = arith.index_cast %c2_i32 : i32 to index
    %c0_24 = arith.constant 0 : index
    %c0_25 = arith.constant 0 : index
    %36 = vector.load %arg9[%35, %c0_24, %c0_25] : memref<8x2x32xf32, #tpu.memory_space<vmem>>, vector<1x2x32xf32>
    %37 = vector.shape_cast %36 : vector<1x2x32xf32> to vector<2x32xf32>
    %38 = vector.shape_cast %34 : vector<2x32xf32> to vector<1x2x32xf32>
    tpu.vector_store %arg9[%35, %c0_24, %c0_25], %38 {strides = array<i32>} : memref<8x2x32xf32, #tpu.memory_space<vmem>>, vector<1x2x32xf32>,
    %c3_i32 = arith.constant 3 : i32
    %39 = arith.index_cast %c3_i32 : i32 to index
    %c0_26 = arith.constant 0 : index
    %c0_27 = arith.constant 0 : index
    %40 = vector.load %arg1[%39, %c0_26, %c0_27] : memref<8x2x32xf32, #tpu.memory_space<vmem>>, vector<1x2x32xf32>
    %41 = vector.shape_cast %40 : vector<1x2x32xf32> to vector<2x32xf32>
    %cst_28 = arith.constant dense<0.000000e+00> : vector<2x32xf32>
    %42 = tpu.matmul %41, %0, %cst_28 {dimension_numbers = #tpu.dot_dimension_numbers<[1], [0], [0], [1], [0, 0, 1, 1], [], []>} : vector<2x32xf32>, vector<32x32xf32>, vector<2x32xf32> -> vector<2x32xf32>
    %43 = vector.broadcast %1 : vector<1x32xf32> to vector<2x32xf32>
    %44 = arith.addf %42, %43 : vector<2x32xf32>
    %45 = arith.index_cast %c3_i32 : i32 to index
    %c0_29 = arith.constant 0 : index
    %c0_30 = arith.constant 0 : index
    %46 = vector.load %arg9[%45, %c0_29, %c0_30] : memref<8x2x32xf32, #tpu.memory_space<vmem>>, vector<1x2x32xf32>
    %47 = vector.shape_cast %46 : vector<1x2x32xf32> to vector<2x32xf32>
    %48 = vector.shape_cast %44 : vector<2x32xf32> to vector<1x2x32xf32>
    tpu.vector_store %arg9[%45, %c0_29, %c0_30], %48 {strides = array<i32>} : memref<8x2x32xf32, #tpu.memory_space<vmem>>, vector<1x2x32xf32>,
    %c4_i32 = arith.constant 4 : i32
    %49 = arith.index_cast %c4_i32 : i32 to index
    %c0_31 = arith.constant 0 : index
    %c0_32 = arith.constant 0 : index
    %50 = vector.load %arg1[%49, %c0_31, %c0_32] : memref<8x2x32xf32, #tpu.memory_space<vmem>>, vector<1x2x32xf32>
    %51 = vector.shape_cast %50 : vector<1x2x32xf32> to vector<2x32xf32>
    %cst_33 = arith.constant dense<0.000000e+00> : vector<2x32xf32>
    %52 = tpu.matmul %51, %0, %cst_33 {dimension_numbers = #tpu.dot_dimension_numbers<[1], [0], [0], [1], [0, 0, 1, 1], [], []>} : vector<2x32xf32>, vector<32x32xf32>, vector<2x32xf32> -> vector<2x32xf32>
    %53 = vector.broadcast %1 : vector<1x32xf32> to vector<2x32xf32>
    %54 = arith.addf %52, %53 : vector<2x32xf32>
    %55 = arith.index_cast %c4_i32 : i32 to index
    %c0_34 = arith.constant 0 : index
    %c0_35 = arith.constant 0 : index
    %56 = vector.load %arg9[%55, %c0_34, %c0_35] : memref<8x2x32xf32, #tpu.memory_space<vmem>>, vector<1x2x32xf32>
    %57 = vector.shape_cast %56 : vector<1x2x32xf32> to vector<2x32xf32>
    %58 = vector.shape_cast %54 : vector<2x32xf32> to vector<1x2x32xf32>
    tpu.vector_store %arg9[%55, %c0_34, %c0_35], %58 {strides = array<i32>} : memref<8x2x32xf32, #tpu.memory_space<vmem>>, vector<1x2x32xf32>,
    %c5_i32 = arith.constant 5 : i32
    %59 = arith.index_cast %c5_i32 : i32 to index
    %c0_36 = arith.constant 0 : index
    %c0_37 = arith.constant 0 : index
    %60 = vector.load %arg1[%59, %c0_36, %c0_37] : memref<8x2x32xf32, #tpu.memory_space<vmem>>, vector<1x2x32xf32>
    %61 = vector.shape_cast %60 : vector<1x2x32xf32> to vector<2x32xf32>
    %cst_38 = arith.constant dense<0.000000e+00> : vector<2x32xf32>
    %62 = tpu.matmul %61, %0, %cst_38 {dimension_numbers = #tpu.dot_dimension_numbers<[1], [0], [0], [1], [0, 0, 1, 1], [], []>} : vector<2x32xf32>, vector<32x32xf32>, vector<2x32xf32> -> vector<2x32xf32>
    %63 = vector.broadcast %1 : vector<1x32xf32> to vector<2x32xf32>
    %64 = arith.addf %62, %63 : vector<2x32xf32>
    %65 = arith.index_cast %c5_i32 : i32 to index
    %c0_39 = arith.constant 0 : index
    %c0_40 = arith.constant 0 : index
    %66 = vector.load %arg9[%65, %c0_39, %c0_40] : memref<8x2x32xf32, #tpu.memory_space<vmem>>, vector<1x2x32xf32>
    %67 = vector.shape_cast %66 : vector<1x2x32xf32> to vector<2x32xf32>
    %68 = vector.shape_cast %64 : vector<2x32xf32> to vector<1x2x32xf32>
    tpu.vector_store %arg9[%65, %c0_39, %c0_40], %68 {strides = array<i32>} : memref<8x2x32xf32, #tpu.memory_space<vmem>>, vector<1x2x32xf32>,
    %c6_i32 = arith.constant 6 : i32
    %69 = arith.index_cast %c6_i32 : i32 to index
    %c0_41 = arith.constant 0 : index
    %c0_42 = arith.constant 0 : index
    %70 = vector.load %arg1[%69, %c0_41, %c0_42] : memref<8x2x32xf32, #tpu.memory_space<vmem>>, vector<1x2x32xf32>
    %71 = vector.shape_cast %70 : vector<1x2x32xf32> to vector<2x32xf32>
    %cst_43 = arith.constant dense<0.000000e+00> : vector<2x32xf32>
    %72 = tpu.matmul %71, %0, %cst_43 {dimension_numbers = #tpu.dot_dimension_numbers<[1], [0], [0], [1], [0, 0, 1, 1], [], []>} : vector<2x32xf32>, vector<32x32xf32>, vector<2x32xf32> -> vector<2x32xf32>
    %73 = vector.broadcast %1 : vector<1x32xf32> to vector<2x32xf32>
    %74 = arith.addf %72, %73 : vector<2x32xf32>
    %75 = arith.index_cast %c6_i32 : i32 to index
    %c0_44 = arith.constant 0 : index
    %c0_45 = arith.constant 0 : index
    %76 = vector.load %arg9[%75, %c0_44, %c0_45] : memref<8x2x32xf32, #tpu.memory_space<vmem>>, vector<1x2x32xf32>
    %77 = vector.shape_cast %76 : vector<1x2x32xf32> to vector<2x32xf32>
    %78 = vector.shape_cast %74 : vector<2x32xf32> to vector<1x2x32xf32>
    tpu.vector_store %arg9[%75, %c0_44, %c0_45], %78 {strides = array<i32>} : memref<8x2x32xf32, #tpu.memory_space<vmem>>, vector<1x2x32xf32>,
    %c7_i32 = arith.constant 7 : i32
    %79 = arith.index_cast %c7_i32 : i32 to index
    %c0_46 = arith.constant 0 : index
    %c0_47 = arith.constant 0 : index
    %80 = vector.load %arg1[%79, %c0_46, %c0_47] : memref<8x2x32xf32, #tpu.memory_space<vmem>>, vector<1x2x32xf32>
    %81 = vector.shape_cast %80 : vector<1x2x32xf32> to vector<2x32xf32>
    %cst_48 = arith.constant dense<0.000000e+00> : vector<2x32xf32>
    %82 = tpu.matmul %81, %0, %cst_48 {dimension_numbers = #tpu.dot_dimension_numbers<[1], [0], [0], [1], [0, 0, 1, 1], [], []>} : vector<2x32xf32>, vector<32x32xf32>, vector<2x32xf32> -> vector<2x32xf32>
    %83 = vector.broadcast %1 : vector<1x32xf32> to vector<2x32xf32>
    %84 = arith.addf %82, %83 : vector<2x32xf32>
    %85 = arith.index_cast %c7_i32 : i32 to index
    %c0_49 = arith.constant 0 : index
    %c0_50 = arith.constant 0 : index
    %86 = vector.load %arg9[%85, %c0_49, %c0_50] : memref<8x2x32xf32, #tpu.memory_space<vmem>>, vector<1x2x32xf32>
    %87 = vector.shape_cast %86 : vector<1x2x32xf32> to vector<2x32xf32>
    %88 = vector.shape_cast %84 : vector<2x32xf32> to vector<1x2x32xf32>
    tpu.vector_store %arg9[%85, %c0_49, %c0_50], %88 {strides = array<i32>} : memref<8x2x32xf32, #tpu.memory_space<vmem>>, vector<1x2x32xf32>,
    %c8_i32 = arith.constant 8 : i32
    %c-1_i32 = arith.constant -1 : i32
    %89 = vector.broadcast %c-1_i32 : i32 to vector<2x1xi32>
    %c0_i32_51 = arith.constant 0 : i32
    %cst_52 = arith.constant 0.000000e+00 : f32
    %90 = vector.broadcast %cst_52 : f32 to vector<2x32xf32>
    %c0_i32_53 = arith.constant 0 : i32
    %91 = vector.broadcast %c0_i32_53 : i32 to vector<2x1xi32>
    %92 = arith.cmpi eq, %89, %91 : vector<2x1xi32>
    %93 = arith.extui %92 : vector<2x1xi1> to vector<2x1xi32>
    %94 = arith.sitofp %93 : vector<2x1xi32> to vector<2x1xf32>
    %95 = vector.broadcast %94 : vector<2x1xf32> to vector<2x32xf32>
    %96 = vector.broadcast %5 : vector<1x32xf32> to vector<2x32xf32>
    %97 = arith.mulf %95, %96 : vector<2x32xf32>
    %98 = arith.addf %90, %97 : vector<2x32xf32>
    %c1_i32_54 = arith.constant 1 : i32
    %99 = vector.broadcast %c1_i32_54 : i32 to vector<2x1xi32>
    %100 = arith.cmpi eq, %89, %99 : vector<2x1xi32>
    %101 = arith.extui %100 : vector<2x1xi1> to vector<2x1xi32>
    %102 = arith.sitofp %101 : vector<2x1xi32> to vector<2x1xf32>
    %103 = vector.broadcast %102 : vector<2x1xf32> to vector<2x32xf32>
    %104 = vector.broadcast %6 : vector<1x32xf32> to vector<2x32xf32>
    %105 = arith.mulf %103, %104 : vector<2x32xf32>
    %106 = arith.addf %98, %105 : vector<2x32xf32>
    %c2_i32_55 = arith.constant 2 : i32
    %107 = vector.broadcast %c2_i32_55 : i32 to vector<2x1xi32>
    %108 = arith.cmpi eq, %89, %107 : vector<2x1xi32>
    %109 = arith.extui %108 : vector<2x1xi1> to vector<2x1xi32>
    %110 = arith.sitofp %109 : vector<2x1xi32> to vector<2x1xf32>
    %111 = vector.broadcast %110 : vector<2x1xf32> to vector<2x32xf32>
    %112 = vector.broadcast %7 : vector<1x32xf32> to vector<2x32xf32>
    %113 = arith.mulf %111, %112 : vector<2x32xf32>
    %114 = arith.addf %106, %113 : vector<2x32xf32>
    %c3_i32_56 = arith.constant 3 : i32
    %115 = vector.broadcast %c3_i32_56 : i32 to vector<2x1xi32>
    %116 = arith.cmpi eq, %89, %115 : vector<2x1xi32>
    %117 = arith.extui %116 : vector<2x1xi1> to vector<2x1xi32>
    %118 = arith.sitofp %117 : vector<2x1xi32> to vector<2x1xf32>
    %119 = vector.broadcast %118 : vector<2x1xf32> to vector<2x32xf32>
    %120 = vector.broadcast %8 : vector<1x32xf32> to vector<2x32xf32>
    %121 = arith.mulf %119, %120 : vector<2x32xf32>
    %122 = arith.addf %114, %121 : vector<2x32xf32>
    %123 = arith.index_cast %c0_i32_51 : i32 to index
    %c0_57 = arith.constant 0 : index
    %c0_58 = arith.constant 0 : index
    %124 = vector.load %arg9[%123, %c0_57, %c0_58] : memref<8x2x32xf32, #tpu.memory_space<vmem>>, vector<1x2x32xf32>
    %125 = vector.shape_cast %124 : vector<1x2x32xf32> to vector<2x32xf32>
    %126 = arith.addf %125, %122 : vector<2x32xf32>
    %127 = math.tanh %126 : vector<2x32xf32>
    %cst_59 = arith.constant dense<0.000000e+00> : vector<2x4xf32>
    %128 = tpu.matmul %127, %2, %cst_59 {dimension_numbers = #tpu.dot_dimension_numbers<[1], [0], [0], [1], [0, 0, 1, 1], [], []>} : vector<2x32xf32>, vector<32x4xf32>, vector<2x4xf32> -> vector<2x4xf32>
    %129 = vector.broadcast %3 : vector<1x4xf32> to vector<2x4xf32>
    %130 = arith.addf %128, %129 : vector<2x4xf32>
    %cst_60 = arith.constant dense<0xFF800000> : vector<2xf32>
    %131 = vector.multi_reduction <maximumf>, %130, %cst_60 [1] : vector<2x4xf32> to vector<2xf32>
    %132 = vector.shape_cast %131 : vector<2xf32> to vector<2x1xf32>
    %133 = vector.broadcast %132 : vector<2x1xf32> to vector<2x4xf32>
    %134 = arith.cmpf oeq, %130, %133 : vector<2x4xf32>
    %c4_i32_61 = arith.constant 4 : i32
    %135 = vector.broadcast %c4_i32_61 : i32 to vector<2x4xi32>
    %136 = arith.select %134, %4, %135 : vector<2x4xi1>, vector<2x4xi32>
    %cst_62 = arith.constant dense<2147483647> : vector<2xi32>
    %137 = vector.multi_reduction <minsi>, %136, %cst_62 [1] : vector<2x4xi32> to vector<2xi32>
    %138 = vector.shape_cast %137 : vector<2xi32> to vector<2x1xi32>
    %139 = arith.index_cast %c0_i32_51 : i32 to index
    %c0_63 = arith.constant 0 : index
    %c0_64 = arith.constant 0 : index
    %140 = vector.load %arg7[%139, %c0_63, %c0_64] : memref<8x2x4xf32, #tpu.memory_space<vmem>>, vector<1x2x4xf32>
    %141 = vector.shape_cast %140 : vector<1x2x4xf32> to vector<2x4xf32>
    %142 = vector.shape_cast %130 : vector<2x4xf32> to vector<1x2x4xf32>
    tpu.vector_store %arg7[%139, %c0_63, %c0_64], %142 {strides = array<i32>} : memref<8x2x4xf32, #tpu.memory_space<vmem>>, vector<1x2x4xf32>,
    %143 = arith.index_cast %c0_i32_51 : i32 to index
    %c0_65 = arith.constant 0 : index
    %c0_66 = arith.constant 0 : index
    %144 = vector.load %arg8[%143, %c0_65, %c0_66] : memref<8x2x1xi32, #tpu.memory_space<vmem>>, vector<1x2x1xi32>
    %145 = vector.shape_cast %144 : vector<1x2x1xi32> to vector<2x1xi32>
    %146 = vector.shape_cast %138 : vector<2x1xi32> to vector<1x2x1xi32>
    tpu.vector_store %arg8[%143, %c0_65, %c0_66], %146 {strides = array<i32>} : memref<8x2x1xi32, #tpu.memory_space<vmem>>, vector<1x2x1xi32>,
    %c1_i32_67 = arith.constant 1 : i32
    %cst_68 = arith.constant 0.000000e+00 : f32
    %147 = vector.broadcast %cst_68 : f32 to vector<2x32xf32>
    %c0_i32_69 = arith.constant 0 : i32
    %148 = vector.broadcast %c0_i32_69 : i32 to vector<2x1xi32>
    %149 = arith.cmpi eq, %138, %148 : vector<2x1xi32>
    %150 = arith.extui %149 : vector<2x1xi1> to vector<2x1xi32>
    %151 = arith.sitofp %150 : vector<2x1xi32> to vector<2x1xf32>
    %152 = vector.broadcast %151 : vector<2x1xf32> to vector<2x32xf32>
    %153 = vector.broadcast %5 : vector<1x32xf32> to vector<2x32xf32>
    %154 = arith.mulf %152, %153 : vector<2x32xf32>
    %155 = arith.addf %147, %154 : vector<2x32xf32>
    %c1_i32_70 = arith.constant 1 : i32
    %156 = vector.broadcast %c1_i32_70 : i32 to vector<2x1xi32>
    %157 = arith.cmpi eq, %138, %156 : vector<2x1xi32>
    %158 = arith.extui %157 : vector<2x1xi1> to vector<2x1xi32>
    %159 = arith.sitofp %158 : vector<2x1xi32> to vector<2x1xf32>
    %160 = vector.broadcast %159 : vector<2x1xf32> to vector<2x32xf32>
    %161 = vector.broadcast %6 : vector<1x32xf32> to vector<2x32xf32>
    %162 = arith.mulf %160, %161 : vector<2x32xf32>
    %163 = arith.addf %155, %162 : vector<2x32xf32>
    %c2_i32_71 = arith.constant 2 : i32
    %164 = vector.broadcast %c2_i32_71 : i32 to vector<2x1xi32>
    %165 = arith.cmpi eq, %138, %164 : vector<2x1xi32>
    %166 = arith.extui %165 : vector<2x1xi1> to vector<2x1xi32>
    %167 = arith.sitofp %166 : vector<2x1xi32> to vector<2x1xf32>
    %168 = vector.broadcast %167 : vector<2x1xf32> to vector<2x32xf32>
    %169 = vector.broadcast %7 : vector<1x32xf32> to vector<2x32xf32>
    %170 = arith.mulf %168, %169 : vector<2x32xf32>
    %171 = arith.addf %163, %170 : vector<2x32xf32>
    %c3_i32_72 = arith.constant 3 : i32
    %172 = vector.broadcast %c3_i32_72 : i32 to vector<2x1xi32>
    %173 = arith.cmpi eq, %138, %172 : vector<2x1xi32>
    %174 = arith.extui %173 : vector<2x1xi1> to vector<2x1xi32>
    %175 = arith.sitofp %174 : vector<2x1xi32> to vector<2x1xf32>
    %176 = vector.broadcast %175 : vector<2x1xf32> to vector<2x32xf32>
    %177 = vector.broadcast %8 : vector<1x32xf32> to vector<2x32xf32>
    %178 = arith.mulf %176, %177 : vector<2x32xf32>
    %179 = arith.addf %171, %178 : vector<2x32xf32>
    %180 = arith.index_cast %c1_i32_67 : i32 to index
    %c0_73 = arith.constant 0 : index
    %c0_74 = arith.constant 0 : index
    %181 = vector.load %arg9[%180, %c0_73, %c0_74] : memref<8x2x32xf32, #tpu.memory_space<vmem>>, vector<1x2x32xf32>
    %182 = vector.shape_cast %181 : vector<1x2x32xf32> to vector<2x32xf32>
    %183 = arith.addf %182, %179 : vector<2x32xf32>
    %184 = math.tanh %183 : vector<2x32xf32>
    %cst_75 = arith.constant dense<0.000000e+00> : vector<2x4xf32>
    %185 = tpu.matmul %184, %2, %cst_75 {dimension_numbers = #tpu.dot_dimension_numbers<[1], [0], [0], [1], [0, 0, 1, 1], [], []>} : vector<2x32xf32>, vector<32x4xf32>, vector<2x4xf32> -> vector<2x4xf32>
    %186 = vector.broadcast %3 : vector<1x4xf32> to vector<2x4xf32>
    %187 = arith.addf %185, %186 : vector<2x4xf32>
    %cst_76 = arith.constant dense<0xFF800000> : vector<2xf32>
    %188 = vector.multi_reduction <maximumf>, %187, %cst_76 [1] : vector<2x4xf32> to vector<2xf32>
    %189 = vector.shape_cast %188 : vector<2xf32> to vector<2x1xf32>
    %190 = vector.broadcast %189 : vector<2x1xf32> to vector<2x4xf32>
    %191 = arith.cmpf oeq, %187, %190 : vector<2x4xf32>
    %c4_i32_77 = arith.constant 4 : i32
    %192 = vector.broadcast %c4_i32_77 : i32 to vector<2x4xi32>
    %193 = arith.select %191, %4, %192 : vector<2x4xi1>, vector<2x4xi32>
    %cst_78 = arith.constant dense<2147483647> : vector<2xi32>
    %194 = vector.multi_reduction <minsi>, %193, %cst_78 [1] : vector<2x4xi32> to vector<2xi32>
    %195 = vector.shape_cast %194 : vector<2xi32> to vector<2x1xi32>
    %196 = arith.index_cast %c1_i32_67 : i32 to index
    %c0_79 = arith.constant 0 : index
    %c0_80 = arith.constant 0 : index
    %197 = vector.load %arg7[%196, %c0_79, %c0_80] : memref<8x2x4xf32, #tpu.memory_space<vmem>>, vector<1x2x4xf32>
    %198 = vector.shape_cast %197 : vector<1x2x4xf32> to vector<2x4xf32>
    %199 = vector.shape_cast %187 : vector<2x4xf32> to vector<1x2x4xf32>
    tpu.vector_store %arg7[%196, %c0_79, %c0_80], %199 {strides = array<i32>} : memref<8x2x4xf32, #tpu.memory_space<vmem>>, vector<1x2x4xf32>,
    %200 = arith.index_cast %c1_i32_67 : i32 to index
    %c0_81 = arith.constant 0 : index
    %c0_82 = arith.constant 0 : index
    %201 = vector.load %arg8[%200, %c0_81, %c0_82] : memref<8x2x1xi32, #tpu.memory_space<vmem>>, vector<1x2x1xi32>
    %202 = vector.shape_cast %201 : vector<1x2x1xi32> to vector<2x1xi32>
    %203 = vector.shape_cast %195 : vector<2x1xi32> to vector<1x2x1xi32>
    tpu.vector_store %arg8[%200, %c0_81, %c0_82], %203 {strides = array<i32>} : memref<8x2x1xi32, #tpu.memory_space<vmem>>, vector<1x2x1xi32>,
    %c2_i32_83 = arith.constant 2 : i32
    %cst_84 = arith.constant 0.000000e+00 : f32
    %204 = vector.broadcast %cst_84 : f32 to vector<2x32xf32>
    %c0_i32_85 = arith.constant 0 : i32
    %205 = vector.broadcast %c0_i32_85 : i32 to vector<2x1xi32>
    %206 = arith.cmpi eq, %195, %205 : vector<2x1xi32>
    %207 = arith.extui %206 : vector<2x1xi1> to vector<2x1xi32>
    %208 = arith.sitofp %207 : vector<2x1xi32> to vector<2x1xf32>
    %209 = vector.broadcast %208 : vector<2x1xf32> to vector<2x32xf32>
    %210 = vector.broadcast %5 : vector<1x32xf32> to vector<2x32xf32>
    %211 = arith.mulf %209, %210 : vector<2x32xf32>
    %212 = arith.addf %204, %211 : vector<2x32xf32>
    %c1_i32_86 = arith.constant 1 : i32
    %213 = vector.broadcast %c1_i32_86 : i32 to vector<2x1xi32>
    %214 = arith.cmpi eq, %195, %213 : vector<2x1xi32>
    %215 = arith.extui %214 : vector<2x1xi1> to vector<2x1xi32>
    %216 = arith.sitofp %215 : vector<2x1xi32> to vector<2x1xf32>
    %217 = vector.broadcast %216 : vector<2x1xf32> to vector<2x32xf32>
    %218 = vector.broadcast %6 : vector<1x32xf32> to vector<2x32xf32>
    %219 = arith.mulf %217, %218 : vector<2x32xf32>
    %220 = arith.addf %212, %219 : vector<2x32xf32>
    %c2_i32_87 = arith.constant 2 : i32
    %221 = vector.broadcast %c2_i32_87 : i32 to vector<2x1xi32>
    %222 = arith.cmpi eq, %195, %221 : vector<2x1xi32>
    %223 = arith.extui %222 : vector<2x1xi1> to vector<2x1xi32>
    %224 = arith.sitofp %223 : vector<2x1xi32> to vector<2x1xf32>
    %225 = vector.broadcast %224 : vector<2x1xf32> to vector<2x32xf32>
    %226 = vector.broadcast %7 : vector<1x32xf32> to vector<2x32xf32>
    %227 = arith.mulf %225, %226 : vector<2x32xf32>
    %228 = arith.addf %220, %227 : vector<2x32xf32>
    %c3_i32_88 = arith.constant 3 : i32
    %229 = vector.broadcast %c3_i32_88 : i32 to vector<2x1xi32>
    %230 = arith.cmpi eq, %195, %229 : vector<2x1xi32>
    %231 = arith.extui %230 : vector<2x1xi1> to vector<2x1xi32>
    %232 = arith.sitofp %231 : vector<2x1xi32> to vector<2x1xf32>
    %233 = vector.broadcast %232 : vector<2x1xf32> to vector<2x32xf32>
    %234 = vector.broadcast %8 : vector<1x32xf32> to vector<2x32xf32>
    %235 = arith.mulf %233, %234 : vector<2x32xf32>
    %236 = arith.addf %228, %235 : vector<2x32xf32>
    %237 = arith.index_cast %c2_i32_83 : i32 to index
    %c0_89 = arith.constant 0 : index
    %c0_90 = arith.constant 0 : index
    %238 = vector.load %arg9[%237, %c0_89, %c0_90] : memref<8x2x32xf32, #tpu.memory_space<vmem>>, vector<1x2x32xf32>
    %239 = vector.shape_cast %238 : vector<1x2x32xf32> to vector<2x32xf32>
    %240 = arith.addf %239, %236 : vector<2x32xf32>
    %241 = math.tanh %240 : vector<2x32xf32>
    %cst_91 = arith.constant dense<0.000000e+00> : vector<2x4xf32>
    %242 = tpu.matmul %241, %2, %cst_91 {dimension_numbers = #tpu.dot_dimension_numbers<[1], [0], [0], [1], [0, 0, 1, 1], [], []>} : vector<2x32xf32>, vector<32x4xf32>, vector<2x4xf32> -> vector<2x4xf32>
    %243 = vector.broadcast %3 : vector<1x4xf32> to vector<2x4xf32>
    %244 = arith.addf %242, %243 : vector<2x4xf32>
    %cst_92 = arith.constant dense<0xFF800000> : vector<2xf32>
    %245 = vector.multi_reduction <maximumf>, %244, %cst_92 [1] : vector<2x4xf32> to vector<2xf32>
    %246 = vector.shape_cast %245 : vector<2xf32> to vector<2x1xf32>
    %247 = vector.broadcast %246 : vector<2x1xf32> to vector<2x4xf32>
    %248 = arith.cmpf oeq, %244, %247 : vector<2x4xf32>
    %c4_i32_93 = arith.constant 4 : i32
    %249 = vector.broadcast %c4_i32_93 : i32 to vector<2x4xi32>
    %250 = arith.select %248, %4, %249 : vector<2x4xi1>, vector<2x4xi32>
    %cst_94 = arith.constant dense<2147483647> : vector<2xi32>
    %251 = vector.multi_reduction <minsi>, %250, %cst_94 [1] : vector<2x4xi32> to vector<2xi32>
    %252 = vector.shape_cast %251 : vector<2xi32> to vector<2x1xi32>
    %253 = arith.index_cast %c2_i32_83 : i32 to index
    %c0_95 = arith.constant 0 : index
    %c0_96 = arith.constant 0 : index
    %254 = vector.load %arg7[%253, %c0_95, %c0_96] : memref<8x2x4xf32, #tpu.memory_space<vmem>>, vector<1x2x4xf32>
    %255 = vector.shape_cast %254 : vector<1x2x4xf32> to vector<2x4xf32>
    %256 = vector.shape_cast %244 : vector<2x4xf32> to vector<1x2x4xf32>
    tpu.vector_store %arg7[%253, %c0_95, %c0_96], %256 {strides = array<i32>} : memref<8x2x4xf32, #tpu.memory_space<vmem>>, vector<1x2x4xf32>,
    %257 = arith.index_cast %c2_i32_83 : i32 to index
    %c0_97 = arith.constant 0 : index
    %c0_98 = arith.constant 0 : index
    %258 = vector.load %arg8[%257, %c0_97, %c0_98] : memref<8x2x1xi32, #tpu.memory_space<vmem>>, vector<1x2x1xi32>
    %259 = vector.shape_cast %258 : vector<1x2x1xi32> to vector<2x1xi32>
    %260 = vector.shape_cast %252 : vector<2x1xi32> to vector<1x2x1xi32>
    tpu.vector_store %arg8[%257, %c0_97, %c0_98], %260 {strides = array<i32>} : memref<8x2x1xi32, #tpu.memory_space<vmem>>, vector<1x2x1xi32>,
    %c3_i32_99 = arith.constant 3 : i32
    %cst_100 = arith.constant 0.000000e+00 : f32
    %261 = vector.broadcast %cst_100 : f32 to vector<2x32xf32>
    %c0_i32_101 = arith.constant 0 : i32
    %262 = vector.broadcast %c0_i32_101 : i32 to vector<2x1xi32>
    %263 = arith.cmpi eq, %252, %262 : vector<2x1xi32>
    %264 = arith.extui %263 : vector<2x1xi1> to vector<2x1xi32>
    %265 = arith.sitofp %264 : vector<2x1xi32> to vector<2x1xf32>
    %266 = vector.broadcast %265 : vector<2x1xf32> to vector<2x32xf32>
    %267 = vector.broadcast %5 : vector<1x32xf32> to vector<2x32xf32>
    %268 = arith.mulf %266, %267 : vector<2x32xf32>
    %269 = arith.addf %261, %268 : vector<2x32xf32>
    %c1_i32_102 = arith.constant 1 : i32
    %270 = vector.broadcast %c1_i32_102 : i32 to vector<2x1xi32>
    %271 = arith.cmpi eq, %252, %270 : vector<2x1xi32>
    %272 = arith.extui %271 : vector<2x1xi1> to vector<2x1xi32>
    %273 = arith.sitofp %272 : vector<2x1xi32> to vector<2x1xf32>
    %274 = vector.broadcast %273 : vector<2x1xf32> to vector<2x32xf32>
    %275 = vector.broadcast %6 : vector<1x32xf32> to vector<2x32xf32>
    %276 = arith.mulf %274, %275 : vector<2x32xf32>
    %277 = arith.addf %269, %276 : vector<2x32xf32>
    %c2_i32_103 = arith.constant 2 : i32
    %278 = vector.broadcast %c2_i32_103 : i32 to vector<2x1xi32>
    %279 = arith.cmpi eq, %252, %278 : vector<2x1xi32>
    %280 = arith.extui %279 : vector<2x1xi1> to vector<2x1xi32>
    %281 = arith.sitofp %280 : vector<2x1xi32> to vector<2x1xf32>
    %282 = vector.broadcast %281 : vector<2x1xf32> to vector<2x32xf32>
    %283 = vector.broadcast %7 : vector<1x32xf32> to vector<2x32xf32>
    %284 = arith.mulf %282, %283 : vector<2x32xf32>
    %285 = arith.addf %277, %284 : vector<2x32xf32>
    %c3_i32_104 = arith.constant 3 : i32
    %286 = vector.broadcast %c3_i32_104 : i32 to vector<2x1xi32>
    %287 = arith.cmpi eq, %252, %286 : vector<2x1xi32>
    %288 = arith.extui %287 : vector<2x1xi1> to vector<2x1xi32>
    %289 = arith.sitofp %288 : vector<2x1xi32> to vector<2x1xf32>
    %290 = vector.broadcast %289 : vector<2x1xf32> to vector<2x32xf32>
    %291 = vector.broadcast %8 : vector<1x32xf32> to vector<2x32xf32>
    %292 = arith.mulf %290, %291 : vector<2x32xf32>
    %293 = arith.addf %285, %292 : vector<2x32xf32>
    %294 = arith.index_cast %c3_i32_99 : i32 to index
    %c0_105 = arith.constant 0 : index
    %c0_106 = arith.constant 0 : index
    %295 = vector.load %arg9[%294, %c0_105, %c0_106] : memref<8x2x32xf32, #tpu.memory_space<vmem>>, vector<1x2x32xf32>
    %296 = vector.shape_cast %295 : vector<1x2x32xf32> to vector<2x32xf32>
    %297 = arith.addf %296, %293 : vector<2x32xf32>
    %298 = math.tanh %297 : vector<2x32xf32>
    %cst_107 = arith.constant dense<0.000000e+00> : vector<2x4xf32>
    %299 = tpu.matmul %298, %2, %cst_107 {dimension_numbers = #tpu.dot_dimension_numbers<[1], [0], [0], [1], [0, 0, 1, 1], [], []>} : vector<2x32xf32>, vector<32x4xf32>, vector<2x4xf32> -> vector<2x4xf32>
    %300 = vector.broadcast %3 : vector<1x4xf32> to vector<2x4xf32>
    %301 = arith.addf %299, %300 : vector<2x4xf32>
    %cst_108 = arith.constant dense<0xFF800000> : vector<2xf32>
    %302 = vector.multi_reduction <maximumf>, %301, %cst_108 [1] : vector<2x4xf32> to vector<2xf32>
    %303 = vector.shape_cast %302 : vector<2xf32> to vector<2x1xf32>
    %304 = vector.broadcast %303 : vector<2x1xf32> to vector<2x4xf32>
    %305 = arith.cmpf oeq, %301, %304 : vector<2x4xf32>
    %c4_i32_109 = arith.constant 4 : i32
    %306 = vector.broadcast %c4_i32_109 : i32 to vector<2x4xi32>
    %307 = arith.select %305, %4, %306 : vector<2x4xi1>, vector<2x4xi32>
    %cst_110 = arith.constant dense<2147483647> : vector<2xi32>
    %308 = vector.multi_reduction <minsi>, %307, %cst_110 [1] : vector<2x4xi32> to vector<2xi32>
    %309 = vector.shape_cast %308 : vector<2xi32> to vector<2x1xi32>
    %310 = arith.index_cast %c3_i32_99 : i32 to index
    %c0_111 = arith.constant 0 : index
    %c0_112 = arith.constant 0 : index
    %311 = vector.load %arg7[%310, %c0_111, %c0_112] : memref<8x2x4xf32, #tpu.memory_space<vmem>>, vector<1x2x4xf32>
    %312 = vector.shape_cast %311 : vector<1x2x4xf32> to vector<2x4xf32>
    %313 = vector.shape_cast %301 : vector<2x4xf32> to vector<1x2x4xf32>
    tpu.vector_store %arg7[%310, %c0_111, %c0_112], %313 {strides = array<i32>} : memref<8x2x4xf32, #tpu.memory_space<vmem>>, vector<1x2x4xf32>,
    %314 = arith.index_cast %c3_i32_99 : i32 to index
    %c0_113 = arith.constant 0 : index
    %c0_114 = arith.constant 0 : index
    %315 = vector.load %arg8[%314, %c0_113, %c0_114] : memref<8x2x1xi32, #tpu.memory_space<vmem>>, vector<1x2x1xi32>
    %316 = vector.shape_cast %315 : vector<1x2x1xi32> to vector<2x1xi32>
    %317 = vector.shape_cast %309 : vector<2x1xi32> to vector<1x2x1xi32>
    tpu.vector_store %arg8[%314, %c0_113, %c0_114], %317 {strides = array<i32>} : memref<8x2x1xi32, #tpu.memory_space<vmem>>, vector<1x2x1xi32>,
    %c4_i32_115 = arith.constant 4 : i32
    %cst_116 = arith.constant 0.000000e+00 : f32
    %318 = vector.broadcast %cst_116 : f32 to vector<2x32xf32>
    %c0_i32_117 = arith.constant 0 : i32
    %319 = vector.broadcast %c0_i32_117 : i32 to vector<2x1xi32>
    %320 = arith.cmpi eq, %309, %319 : vector<2x1xi32>
    %321 = arith.extui %320 : vector<2x1xi1> to vector<2x1xi32>
    %322 = arith.sitofp %321 : vector<2x1xi32> to vector<2x1xf32>
    %323 = vector.broadcast %322 : vector<2x1xf32> to vector<2x32xf32>
    %324 = vector.broadcast %5 : vector<1x32xf32> to vector<2x32xf32>
    %325 = arith.mulf %323, %324 : vector<2x32xf32>
    %326 = arith.addf %318, %325 : vector<2x32xf32>
    %c1_i32_118 = arith.constant 1 : i32
    %327 = vector.broadcast %c1_i32_118 : i32 to vector<2x1xi32>
    %328 = arith.cmpi eq, %309, %327 : vector<2x1xi32>
    %329 = arith.extui %328 : vector<2x1xi1> to vector<2x1xi32>
    %330 = arith.sitofp %329 : vector<2x1xi32> to vector<2x1xf32>
    %331 = vector.broadcast %330 : vector<2x1xf32> to vector<2x32xf32>
    %332 = vector.broadcast %6 : vector<1x32xf32> to vector<2x32xf32>
    %333 = arith.mulf %331, %332 : vector<2x32xf32>
    %334 = arith.addf %326, %333 : vector<2x32xf32>
    %c2_i32_119 = arith.constant 2 : i32
    %335 = vector.broadcast %c2_i32_119 : i32 to vector<2x1xi32>
    %336 = arith.cmpi eq, %309, %335 : vector<2x1xi32>
    %337 = arith.extui %336 : vector<2x1xi1> to vector<2x1xi32>
    %338 = arith.sitofp %337 : vector<2x1xi32> to vector<2x1xf32>
    %339 = vector.broadcast %338 : vector<2x1xf32> to vector<2x32xf32>
    %340 = vector.broadcast %7 : vector<1x32xf32> to vector<2x32xf32>
    %341 = arith.mulf %339, %340 : vector<2x32xf32>
    %342 = arith.addf %334, %341 : vector<2x32xf32>
    %c3_i32_120 = arith.constant 3 : i32
    %343 = vector.broadcast %c3_i32_120 : i32 to vector<2x1xi32>
    %344 = arith.cmpi eq, %309, %343 : vector<2x1xi32>
    %345 = arith.extui %344 : vector<2x1xi1> to vector<2x1xi32>
    %346 = arith.sitofp %345 : vector<2x1xi32> to vector<2x1xf32>
    %347 = vector.broadcast %346 : vector<2x1xf32> to vector<2x32xf32>
    %348 = vector.broadcast %8 : vector<1x32xf32> to vector<2x32xf32>
    %349 = arith.mulf %347, %348 : vector<2x32xf32>
    %350 = arith.addf %342, %349 : vector<2x32xf32>
    %351 = arith.index_cast %c4_i32_115 : i32 to index
    %c0_121 = arith.constant 0 : index
    %c0_122 = arith.constant 0 : index
    %352 = vector.load %arg9[%351, %c0_121, %c0_122] : memref<8x2x32xf32, #tpu.memory_space<vmem>>, vector<1x2x32xf32>
    %353 = vector.shape_cast %352 : vector<1x2x32xf32> to vector<2x32xf32>
    %354 = arith.addf %353, %350 : vector<2x32xf32>
    %355 = math.tanh %354 : vector<2x32xf32>
    %cst_123 = arith.constant dense<0.000000e+00> : vector<2x4xf32>
    %356 = tpu.matmul %355, %2, %cst_123 {dimension_numbers = #tpu.dot_dimension_numbers<[1], [0], [0], [1], [0, 0, 1, 1], [], []>} : vector<2x32xf32>, vector<32x4xf32>, vector<2x4xf32> -> vector<2x4xf32>
    %357 = vector.broadcast %3 : vector<1x4xf32> to vector<2x4xf32>
    %358 = arith.addf %356, %357 : vector<2x4xf32>
    %cst_124 = arith.constant dense<0xFF800000> : vector<2xf32>
    %359 = vector.multi_reduction <maximumf>, %358, %cst_124 [1] : vector<2x4xf32> to vector<2xf32>
    %360 = vector.shape_cast %359 : vector<2xf32> to vector<2x1xf32>
    %361 = vector.broadcast %360 : vector<2x1xf32> to vector<2x4xf32>
    %362 = arith.cmpf oeq, %358, %361 : vector<2x4xf32>
    %c4_i32_125 = arith.constant 4 : i32
    %363 = vector.broadcast %c4_i32_125 : i32 to vector<2x4xi32>
    %364 = arith.select %362, %4, %363 : vector<2x4xi1>, vector<2x4xi32>
    %cst_126 = arith.constant dense<2147483647> : vector<2xi32>
    %365 = vector.multi_reduction <minsi>, %364, %cst_126 [1] : vector<2x4xi32> to vector<2xi32>
    %366 = vector.shape_cast %365 : vector<2xi32> to vector<2x1xi32>
    %367 = arith.index_cast %c4_i32_115 : i32 to index
    %c0_127 = arith.constant 0 : index
    %c0_128 = arith.constant 0 : index
    %368 = vector.load %arg7[%367, %c0_127, %c0_128] : memref<8x2x4xf32, #tpu.memory_space<vmem>>, vector<1x2x4xf32>
    %369 = vector.shape_cast %368 : vector<1x2x4xf32> to vector<2x4xf32>
    %370 = vector.shape_cast %358 : vector<2x4xf32> to vector<1x2x4xf32>
    tpu.vector_store %arg7[%367, %c0_127, %c0_128], %370 {strides = array<i32>} : memref<8x2x4xf32, #tpu.memory_space<vmem>>, vector<1x2x4xf32>,
    %371 = arith.index_cast %c4_i32_115 : i32 to index
    %c0_129 = arith.constant 0 : index
    %c0_130 = arith.constant 0 : index
    %372 = vector.load %arg8[%371, %c0_129, %c0_130] : memref<8x2x1xi32, #tpu.memory_space<vmem>>, vector<1x2x1xi32>
    %373 = vector.shape_cast %372 : vector<1x2x1xi32> to vector<2x1xi32>
    %374 = vector.shape_cast %366 : vector<2x1xi32> to vector<1x2x1xi32>
    tpu.vector_store %arg8[%371, %c0_129, %c0_130], %374 {strides = array<i32>} : memref<8x2x1xi32, #tpu.memory_space<vmem>>, vector<1x2x1xi32>,
    %c5_i32_131 = arith.constant 5 : i32
    %cst_132 = arith.constant 0.000000e+00 : f32
    %375 = vector.broadcast %cst_132 : f32 to vector<2x32xf32>
    %c0_i32_133 = arith.constant 0 : i32
    %376 = vector.broadcast %c0_i32_133 : i32 to vector<2x1xi32>
    %377 = arith.cmpi eq, %366, %376 : vector<2x1xi32>
    %378 = arith.extui %377 : vector<2x1xi1> to vector<2x1xi32>
    %379 = arith.sitofp %378 : vector<2x1xi32> to vector<2x1xf32>
    %380 = vector.broadcast %379 : vector<2x1xf32> to vector<2x32xf32>
    %381 = vector.broadcast %5 : vector<1x32xf32> to vector<2x32xf32>
    %382 = arith.mulf %380, %381 : vector<2x32xf32>
    %383 = arith.addf %375, %382 : vector<2x32xf32>
    %c1_i32_134 = arith.constant 1 : i32
    %384 = vector.broadcast %c1_i32_134 : i32 to vector<2x1xi32>
    %385 = arith.cmpi eq, %366, %384 : vector<2x1xi32>
    %386 = arith.extui %385 : vector<2x1xi1> to vector<2x1xi32>
    %387 = arith.sitofp %386 : vector<2x1xi32> to vector<2x1xf32>
    %388 = vector.broadcast %387 : vector<2x1xf32> to vector<2x32xf32>
    %389 = vector.broadcast %6 : vector<1x32xf32> to vector<2x32xf32>
    %390 = arith.mulf %388, %389 : vector<2x32xf32>
    %391 = arith.addf %383, %390 : vector<2x32xf32>
    %c2_i32_135 = arith.constant 2 : i32
    %392 = vector.broadcast %c2_i32_135 : i32 to vector<2x1xi32>
    %393 = arith.cmpi eq, %366, %392 : vector<2x1xi32>
    %394 = arith.extui %393 : vector<2x1xi1> to vector<2x1xi32>
    %395 = arith.sitofp %394 : vector<2x1xi32> to vector<2x1xf32>
    %396 = vector.broadcast %395 : vector<2x1xf32> to vector<2x32xf32>
    %397 = vector.broadcast %7 : vector<1x32xf32> to vector<2x32xf32>
    %398 = arith.mulf %396, %397 : vector<2x32xf32>
    %399 = arith.addf %391, %398 : vector<2x32xf32>
    %c3_i32_136 = arith.constant 3 : i32
    %400 = vector.broadcast %c3_i32_136 : i32 to vector<2x1xi32>
    %401 = arith.cmpi eq, %366, %400 : vector<2x1xi32>
    %402 = arith.extui %401 : vector<2x1xi1> to vector<2x1xi32>
    %403 = arith.sitofp %402 : vector<2x1xi32> to vector<2x1xf32>
    %404 = vector.broadcast %403 : vector<2x1xf32> to vector<2x32xf32>
    %405 = vector.broadcast %8 : vector<1x32xf32> to vector<2x32xf32>
    %406 = arith.mulf %404, %405 : vector<2x32xf32>
    %407 = arith.addf %399, %406 : vector<2x32xf32>
    %408 = arith.index_cast %c5_i32_131 : i32 to index
    %c0_137 = arith.constant 0 : index
    %c0_138 = arith.constant 0 : index
    %409 = vector.load %arg9[%408, %c0_137, %c0_138] : memref<8x2x32xf32, #tpu.memory_space<vmem>>, vector<1x2x32xf32>
    %410 = vector.shape_cast %409 : vector<1x2x32xf32> to vector<2x32xf32>
    %411 = arith.addf %410, %407 : vector<2x32xf32>
    %412 = math.tanh %411 : vector<2x32xf32>
    %cst_139 = arith.constant dense<0.000000e+00> : vector<2x4xf32>
    %413 = tpu.matmul %412, %2, %cst_139 {dimension_numbers = #tpu.dot_dimension_numbers<[1], [0], [0], [1], [0, 0, 1, 1], [], []>} : vector<2x32xf32>, vector<32x4xf32>, vector<2x4xf32> -> vector<2x4xf32>
    %414 = vector.broadcast %3 : vector<1x4xf32> to vector<2x4xf32>
    %415 = arith.addf %413, %414 : vector<2x4xf32>
    %cst_140 = arith.constant dense<0xFF800000> : vector<2xf32>
    %416 = vector.multi_reduction <maximumf>, %415, %cst_140 [1] : vector<2x4xf32> to vector<2xf32>
    %417 = vector.shape_cast %416 : vector<2xf32> to vector<2x1xf32>
    %418 = vector.broadcast %417 : vector<2x1xf32> to vector<2x4xf32>
    %419 = arith.cmpf oeq, %415, %418 : vector<2x4xf32>
    %c4_i32_141 = arith.constant 4 : i32
    %420 = vector.broadcast %c4_i32_141 : i32 to vector<2x4xi32>
    %421 = arith.select %419, %4, %420 : vector<2x4xi1>, vector<2x4xi32>
    %cst_142 = arith.constant dense<2147483647> : vector<2xi32>
    %422 = vector.multi_reduction <minsi>, %421, %cst_142 [1] : vector<2x4xi32> to vector<2xi32>
    %423 = vector.shape_cast %422 : vector<2xi32> to vector<2x1xi32>
    %424 = arith.index_cast %c5_i32_131 : i32 to index
    %c0_143 = arith.constant 0 : index
    %c0_144 = arith.constant 0 : index
    %425 = vector.load %arg7[%424, %c0_143, %c0_144] : memref<8x2x4xf32, #tpu.memory_space<vmem>>, vector<1x2x4xf32>
    %426 = vector.shape_cast %425 : vector<1x2x4xf32> to vector<2x4xf32>
    %427 = vector.shape_cast %415 : vector<2x4xf32> to vector<1x2x4xf32>
    tpu.vector_store %arg7[%424, %c0_143, %c0_144], %427 {strides = array<i32>} : memref<8x2x4xf32, #tpu.memory_space<vmem>>, vector<1x2x4xf32>,
    %428 = arith.index_cast %c5_i32_131 : i32 to index
    %c0_145 = arith.constant 0 : index
    %c0_146 = arith.constant 0 : index
    %429 = vector.load %arg8[%428, %c0_145, %c0_146] : memref<8x2x1xi32, #tpu.memory_space<vmem>>, vector<1x2x1xi32>
    %430 = vector.shape_cast %429 : vector<1x2x1xi32> to vector<2x1xi32>
    %431 = vector.shape_cast %423 : vector<2x1xi32> to vector<1x2x1xi32>
    tpu.vector_store %arg8[%428, %c0_145, %c0_146], %431 {strides = array<i32>} : memref<8x2x1xi32, #tpu.memory_space<vmem>>, vector<1x2x1xi32>,
    %c6_i32_147 = arith.constant 6 : i32
    %cst_148 = arith.constant 0.000000e+00 : f32
    %432 = vector.broadcast %cst_148 : f32 to vector<2x32xf32>
    %c0_i32_149 = arith.constant 0 : i32
    %433 = vector.broadcast %c0_i32_149 : i32 to vector<2x1xi32>
    %434 = arith.cmpi eq, %423, %433 : vector<2x1xi32>
    %435 = arith.extui %434 : vector<2x1xi1> to vector<2x1xi32>
    %436 = arith.sitofp %435 : vector<2x1xi32> to vector<2x1xf32>
    %437 = vector.broadcast %436 : vector<2x1xf32> to vector<2x32xf32>
    %438 = vector.broadcast %5 : vector<1x32xf32> to vector<2x32xf32>
    %439 = arith.mulf %437, %438 : vector<2x32xf32>
    %440 = arith.addf %432, %439 : vector<2x32xf32>
    %c1_i32_150 = arith.constant 1 : i32
    %441 = vector.broadcast %c1_i32_150 : i32 to vector<2x1xi32>
    %442 = arith.cmpi eq, %423, %441 : vector<2x1xi32>
    %443 = arith.extui %442 : vector<2x1xi1> to vector<2x1xi32>
    %444 = arith.sitofp %443 : vector<2x1xi32> to vector<2x1xf32>
    %445 = vector.broadcast %444 : vector<2x1xf32> to vector<2x32xf32>
    %446 = vector.broadcast %6 : vector<1x32xf32> to vector<2x32xf32>
    %447 = arith.mulf %445, %446 : vector<2x32xf32>
    %448 = arith.addf %440, %447 : vector<2x32xf32>
    %c2_i32_151 = arith.constant 2 : i32
    %449 = vector.broadcast %c2_i32_151 : i32 to vector<2x1xi32>
    %450 = arith.cmpi eq, %423, %449 : vector<2x1xi32>
    %451 = arith.extui %450 : vector<2x1xi1> to vector<2x1xi32>
    %452 = arith.sitofp %451 : vector<2x1xi32> to vector<2x1xf32>
    %453 = vector.broadcast %452 : vector<2x1xf32> to vector<2x32xf32>
    %454 = vector.broadcast %7 : vector<1x32xf32> to vector<2x32xf32>
    %455 = arith.mulf %453, %454 : vector<2x32xf32>
    %456 = arith.addf %448, %455 : vector<2x32xf32>
    %c3_i32_152 = arith.constant 3 : i32
    %457 = vector.broadcast %c3_i32_152 : i32 to vector<2x1xi32>
    %458 = arith.cmpi eq, %423, %457 : vector<2x1xi32>
    %459 = arith.extui %458 : vector<2x1xi1> to vector<2x1xi32>
    %460 = arith.sitofp %459 : vector<2x1xi32> to vector<2x1xf32>
    %461 = vector.broadcast %460 : vector<2x1xf32> to vector<2x32xf32>
    %462 = vector.broadcast %8 : vector<1x32xf32> to vector<2x32xf32>
    %463 = arith.mulf %461, %462 : vector<2x32xf32>
    %464 = arith.addf %456, %463 : vector<2x32xf32>
    %465 = arith.index_cast %c6_i32_147 : i32 to index
    %c0_153 = arith.constant 0 : index
    %c0_154 = arith.constant 0 : index
    %466 = vector.load %arg9[%465, %c0_153, %c0_154] : memref<8x2x32xf32, #tpu.memory_space<vmem>>, vector<1x2x32xf32>
    %467 = vector.shape_cast %466 : vector<1x2x32xf32> to vector<2x32xf32>
    %468 = arith.addf %467, %464 : vector<2x32xf32>
    %469 = math.tanh %468 : vector<2x32xf32>
    %cst_155 = arith.constant dense<0.000000e+00> : vector<2x4xf32>
    %470 = tpu.matmul %469, %2, %cst_155 {dimension_numbers = #tpu.dot_dimension_numbers<[1], [0], [0], [1], [0, 0, 1, 1], [], []>} : vector<2x32xf32>, vector<32x4xf32>, vector<2x4xf32> -> vector<2x4xf32>
    %471 = vector.broadcast %3 : vector<1x4xf32> to vector<2x4xf32>
    %472 = arith.addf %470, %471 : vector<2x4xf32>
    %cst_156 = arith.constant dense<0xFF800000> : vector<2xf32>
    %473 = vector.multi_reduction <maximumf>, %472, %cst_156 [1] : vector<2x4xf32> to vector<2xf32>
    %474 = vector.shape_cast %473 : vector<2xf32> to vector<2x1xf32>
    %475 = vector.broadcast %474 : vector<2x1xf32> to vector<2x4xf32>
    %476 = arith.cmpf oeq, %472, %475 : vector<2x4xf32>
    %c4_i32_157 = arith.constant 4 : i32
    %477 = vector.broadcast %c4_i32_157 : i32 to vector<2x4xi32>
    %478 = arith.select %476, %4, %477 : vector<2x4xi1>, vector<2x4xi32>
    %cst_158 = arith.constant dense<2147483647> : vector<2xi32>
    %479 = vector.multi_reduction <minsi>, %478, %cst_158 [1] : vector<2x4xi32> to vector<2xi32>
    %480 = vector.shape_cast %479 : vector<2xi32> to vector<2x1xi32>
    %481 = arith.index_cast %c6_i32_147 : i32 to index
    %c0_159 = arith.constant 0 : index
    %c0_160 = arith.constant 0 : index
    %482 = vector.load %arg7[%481, %c0_159, %c0_160] : memref<8x2x4xf32, #tpu.memory_space<vmem>>, vector<1x2x4xf32>
    %483 = vector.shape_cast %482 : vector<1x2x4xf32> to vector<2x4xf32>
    %484 = vector.shape_cast %472 : vector<2x4xf32> to vector<1x2x4xf32>
    tpu.vector_store %arg7[%481, %c0_159, %c0_160], %484 {strides = array<i32>} : memref<8x2x4xf32, #tpu.memory_space<vmem>>, vector<1x2x4xf32>,
    %485 = arith.index_cast %c6_i32_147 : i32 to index
    %c0_161 = arith.constant 0 : index
    %c0_162 = arith.constant 0 : index
    %486 = vector.load %arg8[%485, %c0_161, %c0_162] : memref<8x2x1xi32, #tpu.memory_space<vmem>>, vector<1x2x1xi32>
    %487 = vector.shape_cast %486 : vector<1x2x1xi32> to vector<2x1xi32>
    %488 = vector.shape_cast %480 : vector<2x1xi32> to vector<1x2x1xi32>
    tpu.vector_store %arg8[%485, %c0_161, %c0_162], %488 {strides = array<i32>} : memref<8x2x1xi32, #tpu.memory_space<vmem>>, vector<1x2x1xi32>,
    %c7_i32_163 = arith.constant 7 : i32
    %cst_164 = arith.constant 0.000000e+00 : f32
    %489 = vector.broadcast %cst_164 : f32 to vector<2x32xf32>
    %c0_i32_165 = arith.constant 0 : i32
    %490 = vector.broadcast %c0_i32_165 : i32 to vector<2x1xi32>
    %491 = arith.cmpi eq, %480, %490 : vector<2x1xi32>
    %492 = arith.extui %491 : vector<2x1xi1> to vector<2x1xi32>
    %493 = arith.sitofp %492 : vector<2x1xi32> to vector<2x1xf32>
    %494 = vector.broadcast %493 : vector<2x1xf32> to vector<2x32xf32>
    %495 = vector.broadcast %5 : vector<1x32xf32> to vector<2x32xf32>
    %496 = arith.mulf %494, %495 : vector<2x32xf32>
    %497 = arith.addf %489, %496 : vector<2x32xf32>
    %c1_i32_166 = arith.constant 1 : i32
    %498 = vector.broadcast %c1_i32_166 : i32 to vector<2x1xi32>
    %499 = arith.cmpi eq, %480, %498 : vector<2x1xi32>
    %500 = arith.extui %499 : vector<2x1xi1> to vector<2x1xi32>
    %501 = arith.sitofp %500 : vector<2x1xi32> to vector<2x1xf32>
    %502 = vector.broadcast %501 : vector<2x1xf32> to vector<2x32xf32>
    %503 = vector.broadcast %6 : vector<1x32xf32> to vector<2x32xf32>
    %504 = arith.mulf %502, %503 : vector<2x32xf32>
    %505 = arith.addf %497, %504 : vector<2x32xf32>
    %c2_i32_167 = arith.constant 2 : i32
    %506 = vector.broadcast %c2_i32_167 : i32 to vector<2x1xi32>
    %507 = arith.cmpi eq, %480, %506 : vector<2x1xi32>
    %508 = arith.extui %507 : vector<2x1xi1> to vector<2x1xi32>
    %509 = arith.sitofp %508 : vector<2x1xi32> to vector<2x1xf32>
    %510 = vector.broadcast %509 : vector<2x1xf32> to vector<2x32xf32>
    %511 = vector.broadcast %7 : vector<1x32xf32> to vector<2x32xf32>
    %512 = arith.mulf %510, %511 : vector<2x32xf32>
    %513 = arith.addf %505, %512 : vector<2x32xf32>
    %c3_i32_168 = arith.constant 3 : i32
    %514 = vector.broadcast %c3_i32_168 : i32 to vector<2x1xi32>
    %515 = arith.cmpi eq, %480, %514 : vector<2x1xi32>
    %516 = arith.extui %515 : vector<2x1xi1> to vector<2x1xi32>
    %517 = arith.sitofp %516 : vector<2x1xi32> to vector<2x1xf32>
    %518 = vector.broadcast %517 : vector<2x1xf32> to vector<2x32xf32>
    %519 = vector.broadcast %8 : vector<1x32xf32> to vector<2x32xf32>
    %520 = arith.mulf %518, %519 : vector<2x32xf32>
    %521 = arith.addf %513, %520 : vector<2x32xf32>
    %522 = arith.index_cast %c7_i32_163 : i32 to index
    %c0_169 = arith.constant 0 : index
    %c0_170 = arith.constant 0 : index
    %523 = vector.load %arg9[%522, %c0_169, %c0_170] : memref<8x2x32xf32, #tpu.memory_space<vmem>>, vector<1x2x32xf32>
    %524 = vector.shape_cast %523 : vector<1x2x32xf32> to vector<2x32xf32>
    %525 = arith.addf %524, %521 : vector<2x32xf32>
    %526 = math.tanh %525 : vector<2x32xf32>
    %cst_171 = arith.constant dense<0.000000e+00> : vector<2x4xf32>
    %527 = tpu.matmul %526, %2, %cst_171 {dimension_numbers = #tpu.dot_dimension_numbers<[1], [0], [0], [1], [0, 0, 1, 1], [], []>} : vector<2x32xf32>, vector<32x4xf32>, vector<2x4xf32> -> vector<2x4xf32>
    %528 = vector.broadcast %3 : vector<1x4xf32> to vector<2x4xf32>
    %529 = arith.addf %527, %528 : vector<2x4xf32>
    %cst_172 = arith.constant dense<0xFF800000> : vector<2xf32>
    %530 = vector.multi_reduction <maximumf>, %529, %cst_172 [1] : vector<2x4xf32> to vector<2xf32>
    %531 = vector.shape_cast %530 : vector<2xf32> to vector<2x1xf32>
    %532 = vector.broadcast %531 : vector<2x1xf32> to vector<2x4xf32>
    %533 = arith.cmpf oeq, %529, %532 : vector<2x4xf32>
    %c4_i32_173 = arith.constant 4 : i32
    %534 = vector.broadcast %c4_i32_173 : i32 to vector<2x4xi32>
    %535 = arith.select %533, %4, %534 : vector<2x4xi1>, vector<2x4xi32>
    %cst_174 = arith.constant dense<2147483647> : vector<2xi32>
    %536 = vector.multi_reduction <minsi>, %535, %cst_174 [1] : vector<2x4xi32> to vector<2xi32>
    %537 = vector.shape_cast %536 : vector<2xi32> to vector<2x1xi32>
    %538 = arith.index_cast %c7_i32_163 : i32 to index
    %c0_175 = arith.constant 0 : index
    %c0_176 = arith.constant 0 : index
    %539 = vector.load %arg7[%538, %c0_175, %c0_176] : memref<8x2x4xf32, #tpu.memory_space<vmem>>, vector<1x2x4xf32>
    %540 = vector.shape_cast %539 : vector<1x2x4xf32> to vector<2x4xf32>
    %541 = vector.shape_cast %529 : vector<2x4xf32> to vector<1x2x4xf32>
    tpu.vector_store %arg7[%538, %c0_175, %c0_176], %541 {strides = array<i32>} : memref<8x2x4xf32, #tpu.memory_space<vmem>>, vector<1x2x4xf32>,
    %542 = arith.index_cast %c7_i32_163 : i32 to index
    %c0_177 = arith.constant 0 : index
    %c0_178 = arith.constant 0 : index
    %543 = vector.load %arg8[%542, %c0_177, %c0_178] : memref<8x2x1xi32, #tpu.memory_space<vmem>>, vector<1x2x1xi32>
    %544 = vector.shape_cast %543 : vector<1x2x1xi32> to vector<2x1xi32>
    %545 = vector.shape_cast %537 : vector<2x1xi32> to vector<1x2x1xi32>
    tpu.vector_store %arg8[%542, %c0_177, %c0_178], %545 {strides = array<i32>} : memref<8x2x1xi32, #tpu.memory_space<vmem>>, vector<1x2x1xi32>,
    %c8_i32_179 = arith.constant 8 : i32
    return
  }
  func.func @transform_0(%arg0: i32) -> (i32, i32, i32) {
    %c0_i32 = arith.constant 0 : i32
    %c0_i32_0 = arith.constant 0 : i32
    %c0_i32_1 = arith.constant 0 : i32
    return %c0_i32, %arg0, %c0_i32_0 : i32, i32, i32
  }
  func.func @transform_1(%arg0: i32) -> (i32, i32) {
    %c0_i32 = arith.constant 0 : i32
    %c0_i32_0 = arith.constant 0 : i32
    %c0_i32_1 = arith.constant 0 : i32
    return %c0_i32, %c0_i32_0 : i32, i32
  }
  func.func @transform_2(%arg0: i32) -> (i32, i32) {
    %c0_i32 = arith.constant 0 : i32
    %c0_i32_0 = arith.constant 0 : i32
    %c0_i32_1 = arith.constant 0 : i32
    return %c0_i32, %c0_i32_0 : i32, i32
  }
  func.func @transform_3(%arg0: i32) -> (i32, i32) {
    %c0_i32 = arith.constant 0 : i32
    %c0_i32_0 = arith.constant 0 : i32
    %c0_i32_1 = arith.constant 0 : i32
    return %c0_i32, %c0_i32_0 : i32, i32
  }
  func.func @transform_4(%arg0: i32) -> (i32, i32) {
    %c0_i32 = arith.constant 0 : i32
    %c0_i32_0 = arith.constant 0 : i32
    %c0_i32_1 = arith.constant 0 : i32
    return %c0_i32, %c0_i32_0 : i32, i32
  }
  func.func @transform_5(%arg0: i32) -> (i32, i32) {
    %c0_i32 = arith.constant 0 : i32
    %c0_i32_0 = arith.constant 0 : i32
    %c0_i32_1 = arith.constant 0 : i32
    return %c0_i32, %c0_i32_0 : i32, i32
  }
  func.func @transform_6(%arg0: i32) -> (i32, i32, i32) {
    %c0_i32 = arith.constant 0 : i32
    %c0_i32_0 = arith.constant 0 : i32
    %c0_i32_1 = arith.constant 0 : i32
    return %c0_i32, %arg0, %c0_i32_0 : i32, i32, i32
  }
  func.func @transform_7(%arg0: i32) -> (i32, i32, i32) {
    %c0_i32 = arith.constant 0 : i32
    %c0_i32_0 = arith.constant 0 : i32
    %c0_i32_1 = arith.constant 0 : i32
    return %c0_i32, %arg0, %c0_i32_0 : i32, i32, i32
  }
}

</mosaic_0001>

<bundles_post_ra>
// kernel: tpu_custom_call.1
= control target key start
LH: loop header
LB: loop body
LE: loop exit
PB: predicated region body
PF: predicated region fallthrough
CT: control target
= control target key end

     0   :  { %13 = vsyncpa [#allocation4], 0  ;;  %s2118_s24 = smov [#allocation3]   ;;  %s2524_s0 = inlined_call_operand.hbm [shape: f32[8,2,32], index: 0, kind: input, shape index: {}]   ;;  %s2525_s1 = inlined_call_operand.vmem [shape: f32[32,32], index: 1, kind: input, shape index: {}]   ;;  %s2526_s2 = inlined_call_operand.vmem [shape: f32[4,32], index: 2, kind: input, shape index: {}]   ;;  %s2527_s3 = inlined_call_operand.vmem [shape: f32[32,4], index: 3, kind: input, shape index: {}]   ;;  %s2528_s4 = inlined_call_operand.vmem [shape: f32[1,32], index: 4, kind: input, shape index: {}]   ;;  %s2529_s5 = inlined_call_operand.vmem [shape: f32[1,4], index: 5, kind: input, shape index: {}]   ;;  %s2530_s6 = inlined_call_operand.vmem [shape: f32[8,2,4], index: 6, kind: output, shape index: {0}]   ;;  %s2531_s7 = inlined_call_operand.vmem [shape: s32[8,2,1], index: 7, kind: output, shape index: {1}]  }
   0x1   :  { %s19_s25 = sshll.u32 %s2118_s24, 4  ;;  %s2094_s28 = scalar_lea.hbm %s2524_s0, 256  ;;  %s20_s25 = int_to_ptr.vmem [resolvable:$true] %s19_s25 }
   0x2   :  { %p2095_p0 = scmp.ne.s32.totalorder %s2524_s0, %s2094_s28  ;;  %p2098_p1 = scmp.lt.u32.totalorder %s2094_s28, %s2524_s0 }
   0x4   :  { %p2100_p2 = pnand %p2098_p1, %p2095_p0 }
   0x6   :  { %2103 = shalt.err (!%p2100_p2)
}
   0x7   :  { %s2104_s10 = scalar_lea.vmem %s20_s25, 256  ;;  %p2109_p4 = scmp.lt.s32.totalorder %s20_s25, %s20_s25 }
   0x8   :  { %p2105_p3 = scmp.ne.s32.totalorder %s20_s25, %s2104_s10  ;;  %p2110_p5 = scmp.lt.s32.totalorder %s2104_s10, %s2104_s10 }
   0xa   :  { %p2111_p6 = por %p2110_p5, %p2109_p4 }
   0xc   :  { %p2112_p7 = pnand %p2111_p6, %p2105_p3 }
   0xe   :  { %2115 = shalt.err (!%p2112_p7)
}
   0xf   :  { %s2119_s11 = smov 32   ;;  %s2120_s12 = smov 2  }
  0x10   :  { %25 = dma.hbm_to_vmem [thread:$0]  %s2524_s0, 256, %s20_s25, [#allocation4], %s2119_s11, %s2119_s11, %s2120_s12  }
  0x11   :  { %2116 = dma.done.wait [#allocation4], 256  }
  0x12   :  { %2117 = vsyncadd [#allocation4], 4294967040  ;;  %v2121_v0 = vmov 0.0|0.0   ;;  %vm2122_vm0 = vmmov 0   ;;  %v2123_v1 = vmov 0.0   ;;  %v39_v2 = vld [vmem:[%s2525_s1] sm:$0xff]  ;;  %v49_v51 = vlaneseq }
  0x13   :  { %1976 = vmatprep.subr.bf16.mxu0 %v2121_v0  ;;  %1808 = vmatprep.mubr.msk.f32.mxu0 %vm2122_vm0, %v2123_v1  ;;  %v40_v3 = vld [vmem:[%s2525_s1 + $0x8] sm:$0xff]  ;;  %v41_v4 = vld [vmem:[%s2525_s1 + $0x10] sm:$0xff]  ;;  %v42_v6 = vld [vmem:[%s2525_s1 + $0x18] sm:$0xff]  ;;  %vm62_vm1 = vcmask 261120   ;;  %vm136_vm2 = vcmask 254976   ;;  %vm783_vm3 = vcmask 25600  }
  0x14   :  { %1982 = vmatprep.subr.bf16.mxu1 %v2121_v0  ;;  %1819 = vmatprep.mubr.msk.f32.mxu1 %vm2122_vm0, %v2123_v1  ;;  %v2191_v5 = vpack.c.bf16 %v40_v3, %v39_v2  ;;  %v2197_v7 = vpack.c.bf16 %v42_v6, %v41_v4  ;;  %v55_v8 = vld [vmem:[#allocation3] sm:$0x3]  ;;  %v216_v9 = vld [vmem:[#allocation3 + $0x4] sm:$0x3]  ;;  %v370_v10 = vld [vmem:[#allocation3 + $0x8] sm:$0x3] }
  0x15   :  { %v524_v11 = vld [vmem:[#allocation3 + $0xc] sm:$0x3]  ;;  %v44_v12 = vld [vmem:[%s2527_s3] sm:$0xff]  ;;  %v45_v13 = vld [vmem:[%s2527_s3 + $0x8] sm:$0xff]  ;;  %v2312_v52 = vand.u32 127, %v49_v51  ;;  %vm805_vm6 = vcmask 1024  }
  0x16   :  { %1978 = vmatpush3.bf16.msra.mxu0 %v2191_v5  ;;  %1984 = vmatpush3.bf16.msra.mxu1 %v2191_v5  ;;  %v2233_v14 = vpack.c.bf16 %v45_v13, %v44_v12  ;;  %v46_v15 = vld [vmem:[%s2527_s3 + $0x10] sm:$0xff]  ;;  %v47_v16 = vld [vmem:[%s2527_s3 + $0x18] sm:$0xff]  ;;  %v2253_v18 = vld [vmem:[%s2526_s2] ss:$0 sm:$0xff] }
  0x17   :  { %1979 = vmatprep.subr.bf16.mxu0 %v2121_v0  ;;  %1985 = vmatprep.subr.bf16.mxu1 %v2121_v0  ;;  %v2243_v17 = vpack.c.bf16 %v47_v16, %v46_v15  ;;  %v2258_v19 = vld [vmem:[%s2526_s2 + $0x1] ss:$0 sm:$0xff]  ;;  %v681_v20 = vmul.f32 0.0, %v2253_v18  ;;  %v2265_v22 = vld [vmem:[%s2526_s2 + $0x2] ss:$0 sm:$0xff] }
  0x18   :  { %v687_v21 = vmul.f32 0.0, %v2258_v19  ;;  %v2270_v23 = vld [vmem:[%s2528_s4] ss:$0 sm:$0xff]  ;;  %v693_v25 = vmul.f32 0.0, %v2265_v22  ;;  %v2276_v26 = vld [vmem:[%s2526_s2 + $0x3] ss:$0 sm:$0xff] }
  0x19   :  { %v699_v31 = vmul.f32 0.0, %v2276_v26  ;;  %v2297_v45 = vld [vmem:[%s2529_s5] ss:$0 sm:$0xff]  ;;  %v139_v50 = vld [vmem:[#allocation3 + $0x2] sm:$0x3] }
  0x1a   :  { %1981 = vmatpush3.bf16.msra.mxu0 %v2197_v7  ;;  %1987 = vmatpush3.bf16.msra.mxu1 %v2197_v7  ;;  %v688_v24 = vadd.f32 %v687_v21, %v681_v20  ;;  %v293_v63 = vld [vmem:[#allocation3 + $0x6] sm:$0x3]  ;;  %v447_v4 = vld [vmem:[#allocation3 + $0xa] sm:$0x3]  ;;  %v601_v6 = vld [vmem:[#allocation3 + $0xe] sm:$0x3] }
  0x1b   :  { %1988 = vmatprep.subr.bf16.mxu0 %v2121_v0  ;;  %1994 = vmatprep.subr.bf16.mxu1 %v2121_v0 }
  0x1c   :  { %v694_v30 = vadd.f32 %v693_v25, %v688_v24 }
  0x1d   :  { %1809 = vmatmul.mubr.msk.f32.vlgmr.msra.gmra.mrb[0].mxu0 %vm62_vm1, %v55_v8  ;;  %1820 = vmatmul.mubr.msk.f32.vlgmr.msra.gmra.mrb[0].mxu1 %vm62_vm1, %v139_v50 }
  0x1e   :  { %1990 = vmatpush3.bf16.msra.mxu0 %v2191_v5  ;;  %1830 = vmatprep.mubr.msk.f32.mxu0 %vm2122_vm0, %v2123_v1  ;;  %v700_v32 = vadd.f32 %v699_v31, %v694_v30 }
  0x1f   :  { %1991 = vmatprep.subr.bf16.mxu0 %v2121_v0  ;;  %1996 = vmatpush3.bf16.msra.mxu1 %v2191_v5 }
  0x20   :  { %1841 = vmatprep.mubr.msk.f32.mxu1 %vm2122_vm0, %v2123_v1  ;;  %1997 = vmatprep.subr.bf16.mxu1 %v2121_v0 }
  0x22   :  { %1993 = vmatpush3.bf16.msra.mxu0 %v2197_v7 }
  0x23   :  { %2000 = vmatprep.subr.bf16.mxu0 %v2121_v0  ;;  %1999 = vmatpush3.bf16.msra.mxu1 %v2197_v7 }
  0x24   :  { %2006 = vmatprep.subr.bf16.mxu1 %v2121_v0 }
  0x25   :  { %1831 = vmatmul.mubr.msk.f32.vlgmr.msra.gmra.mrb[2].mxu0 %vm62_vm1, %v216_v9 }
  0x26   :  { %2002 = vmatpush3.bf16.msra.mxu0 %v2191_v5  ;;  %1852 = vmatprep.mubr.msk.f32.mxu0 %vm2122_vm0, %v2123_v1 }
  0x27   :  { %2003 = vmatprep.subr.bf16.mxu0 %v2121_v0  ;;  %1842 = vmatmul.mubr.msk.f32.vlgmr.msra.gmra.mrb[2].mxu1 %vm62_vm1, %v293_v63 }
  0x28   :  { %2008 = vmatpush3.bf16.msra.mxu1 %v2191_v5  ;;  %1863 = vmatprep.mubr.msk.f32.mxu1 %vm2122_vm0, %v2123_v1 }
  0x29   :  { %2009 = vmatprep.subr.bf16.mxu1 %v2121_v0 }
  0x2a   :  { %2005 = vmatpush3.bf16.msra.mxu0 %v2197_v7 }
  0x2b   :  { %2012 = vmatprep.subr.bf16.mxu0 %v2121_v0 }
  0x2c   :  { %2011 = vmatpush3.bf16.msra.mxu1 %v2197_v7 }
  0x2d   :  { %1853 = vmatmul.mubr.msk.f32.vlgmr.msra.gmra.mrb[4].mxu0 %vm62_vm1, %v370_v10  ;;  %2018 = vmatprep.subr.bf16.mxu1 %v2121_v0 }
  0x2e   :  { %2014 = vmatpush3.bf16.msra.mxu0 %v2191_v5  ;;  %1874 = vmatprep.mubr.msk.f32.mxu0 %vm2122_vm0, %v2123_v1 }
  0x2f   :  { %2015 = vmatprep.subr.bf16.mxu0 %v2121_v0  ;;  %1864 = vmatmul.mubr.msk.f32.vlgmr.msra.gmra.mrb[4].mxu1 %vm62_vm1, %v447_v4 }
  0x30   :  { %2020 = vmatpush3.bf16.msra.mxu1 %v2191_v5  ;;  %1885 = vmatprep.mubr.msk.f32.mxu1 %vm2122_vm0, %v2123_v1 }
  0x31   :  { %2021 = vmatprep.subr.bf16.mxu1 %v2121_v0 }
  0x32   :  { %2017 = vmatpush3.bf16.msra.mxu0 %v2197_v7 }
  0x33   :  { %2024 = vmatprep.subr.bf16.mxu0 %v2121_v0 }
  0x34   :  { %2023 = vmatpush3.bf16.msra.mxu1 %v2197_v7 }
  0x35   :  { %1875 = vmatmul.mubr.msk.f32.vlgmr.msra.gmra.mrb[6].mxu0 %vm62_vm1, %v524_v11  ;;  %2030 = vmatprep.subr.bf16.mxu1 %v2121_v0 }
  0x36   :  { %2026 = vmatpush3.bf16.msra.mxu0 %v2233_v14  ;;  %1896 = vmatprep.mubr.msk.f32.mxu0 %vm2122_vm0, %v2123_v1 }
  0x37   :  { %2027 = vmatprep.subr.bf16.mxu0 %v2121_v0  ;;  %1886 = vmatmul.mubr.msk.f32.vlgmr.msra.gmra.mrb[6].mxu1 %vm62_vm1, %v601_v6 }
  0x38   :  { %2032 = vmatpush3.bf16.msra.mxu1 %v2233_v14  ;;  %1907 = vmatprep.mubr.msk.f32.mxu1 %vm2122_vm0, %v2123_v1 }
  0x39   :  { %2033 = vmatprep.subr.bf16.mxu1 %v2121_v0 }
  0x3a   :  { %2029 = vmatpush3.bf16.msra.mxu0 %v2243_v17 }
  0x3b   :  { %2036 = vmatprep.subr.bf16.mxu0 %v2121_v0 }
  0x3c   :  { %2035 = vmatpush3.bf16.msra.mxu1 %v2243_v17 }
  0x3d   :  { %2042 = vmatprep.subr.bf16.mxu1 %v2121_v0 }
  0xf0   :  { %v132_v27 = vpop.f32.mrb[0].mxu0  ;;  %v209_v62 = vpop.f32.mrb[0].mxu1 }
  0xf1   :  { %v133_v28 = vadd.f32 %v2270_v23, %v132_v27  ;;  %v1810_v29 = vpop.f32.mrb[1].mxu0  ;;  %v1821_v2 = vpop.f32.mrb[1].mxu1  ;;  %v210_v3 = vadd.f32 %v2270_v23, %v209_v62 }
  0xf3   :  { %137 = vst.msk [vmem:[#allocation2] sm:$0x3] %vm136_vm2, %v133_v28  ;;  %214 = vst.msk [vmem:[#allocation2 + $0x2] sm:$0x3] %vm136_vm2, %v210_v3 }
  0xf8   :  { %v286_v36 = vpop.f32.mrb[2].mxu0 }
  0xf9   :  { %v287_v37 = vadd.f32 %v2270_v23, %v286_v36  ;;  %v1832_v38 = vpop.f32.mrb[3].mxu0 }
  0xfa   :  { %v701_v33 = vld [vmem:[#allocation2] sm:$0x3]  ;;  %v827_v28 = vld [vmem:[#allocation2 + $0x2] sm:$0x3] }
  0xfb   :  { %v702_v34 = vadd.f32 %v701_v33, %v700_v32  ;;  %291 = vst.msk [vmem:[#allocation2 + $0x4] sm:$0x3] %vm136_vm2, %v287_v37  ;;  %v363_v32 = vpop.f32.mrb[2].mxu1 }
  0xfc   :  { %v364_v33 = vadd.f32 %v2270_v23, %v363_v32 }
  0xfd   :  { %2078 = vtanh.f32 %v702_v34  ;;  %v1843_v34 = vpop.f32.mrb[3].mxu1 }
  0xfe   :  { %368 = vst.msk [vmem:[#allocation2 + $0x6] sm:$0x3] %vm136_vm2, %v364_v33 }
 0x100   :  { %v440_v39 = vpop.f32.mrb[4].mxu0 }
 0x101   :  { %v441_v40 = vadd.f32 %v2270_v23, %v440_v39  ;;  %v1854_v41 = vpop.f32.mrb[5].mxu0 }
 0x103   :  { %445 = vst.msk [vmem:[#allocation2 + $0x8] sm:$0x3] %vm136_vm2, %v441_v40 }
 0x107   :  { %v2079_v35 = vpop.eup %2078 }
 0x108   :  { %1897 = vmatmul.mubr.msk.f32.vlgmr.msra.gmra.mrb[8].mxu0 %vm62_vm1, %v2079_v35  ;;  %v594_v42 = vpop.f32.mrb[6].mxu0  ;;  %v517_v35 = vpop.f32.mrb[4].mxu1 }
 0x109   :  { %2038 = vmatpush3.bf16.msra.mxu0 %v2233_v14  ;;  %1918 = vmatprep.mubr.msk.f32.mxu0 %vm2122_vm0, %v2123_v1  ;;  %v595_v43 = vadd.f32 %v2270_v23, %v594_v42  ;;  %v1876_v44 = vpop.f32.mrb[7].mxu0  ;;  %v518_v36 = vadd.f32 %v2270_v23, %v517_v35  ;;  %v1865_v37 = vpop.f32.mrb[5].mxu1 }
 0x10a   :  { %2039 = vmatprep.subr.bf16.mxu0 %v2121_v0  ;;  %v671_v38 = vpop.f32.mrb[6].mxu1 }
 0x10b   :  { %599 = vst.msk [vmem:[#allocation2 + $0xc] sm:$0x3] %vm136_vm2, %v595_v43  ;;  %522 = vst.msk [vmem:[#allocation2 + $0xa] sm:$0x3] %vm136_vm2, %v518_v36  ;;  %v672_v39 = vadd.f32 %v2270_v23, %v671_v38  ;;  %v1887_v40 = vpop.f32.mrb[7].mxu1 }
 0x10d   :  { %2041 = vmatpush3.bf16.msra.mxu0 %v2243_v17  ;;  %676 = vst.msk [vmem:[#allocation2 + $0xe] sm:$0x3] %vm136_vm2, %v672_v39 }
 0x10e   :  { %2048 = vmatprep.subr.bf16.mxu0 %v2121_v0 }
 0x1db   :  { %v779_v46 = vpop.f32.mrb[8].mxu0 }
 0x1dc   :  { %v780_v47 = vadd.f32 %v2297_v45, %v779_v46  ;;  %v1898_v48 = vpop.f32.mrb[9].mxu0 }
 0x1de   :  { %804 = vst.msk [vmem:[%s2530_s6] sm:$0x3] %vm783_vm3, %v780_v47  ;;  %v784_v49 = vsel %vm783_vm3, %v780_v47, -inf }
 0x1df   :  { %785 = vmax.xlane.f32.xlu0 %v784_v49 }
 0x26c   :  { %v786_v53 = vpop.xlane.xlu0 %785 }
 0x26d   :  { %vm787_vm4 = vcmp.eq.f32.partialorder %v780_v47, %v786_v53 }
 0x26e   :  { %v788_v54 = vsel %vm787_vm4, %v2312_v52, 4 }
 0x26f   :  { %v789_v55 = vsel %vm783_vm3, %v788_v54, 2147483647 }
 0x270   :  { %v791_v56 = vshra.s32 %v789_v55, 16  ;;  %v790_v58 = vand.u32 65535, %v789_v55 }
 0x272   :  { %v793_v57 = vcvt.s32.f32 %v791_v56  ;;  %v792_v60 = vcvt.s32.f32 %v790_v58 }
 0x274   :  { %794 = vmin.xlane.f32.xlu0 %v793_v57 }
 0x301   :  { %v795_v59 = vpop.xlane.xlu0 %794 }
 0x302   :  { %vm796_vm5 = vcmp.eq.f32.partialorder %v793_v57, %v795_v59  ;;  %v801_v5 = vcvt.f32.s32 %v795_v59 }
 0x303   :  { %v797_v61 = vsel %vm796_vm5, %v792_v60, inf }
 0x304   :  { %798 = vmin.xlane.f32.xlu1 %v797_v61  ;;  %v802_v9 = vshll.u32 %v801_v5, 16 }
 0x391   :  { %v799_v8 = vpop.xlane.xlu1 %798 }
 0x392   :  { %v800_v7 = vcvt.f32.s32 %v799_v8 }
 0x394   :  { %v803_v10 = vadd.s32 %v802_v9, %v800_v7  ;;  %v947_v7 = vld [vmem:[#allocation2 + $0x4] sm:$0x3] }
 0x396   :  { %806 = vst.msk [vmem:[%s2531_s7] sm:$0x3] %vm805_vm6, %v803_v10  ;;  %vm807_vm7 = vcmp.eq.s32.totalorder %v803_v10, 0  ;;  %vm812_vm8 = vcmp.eq.s32.totalorder %v803_v10, 1  ;;  %vm817_vm9 = vcmp.eq.s32.totalorder %v803_v10, 2  ;;  %vm822_vm10 = vcmp.eq.s32.totalorder %v803_v10, 3 }
 0x397   :  { %v1671_v11 = vsel %vm807_vm7, 1.0, %v2123_v1  ;;  %v1672_v12 = vsel %vm812_vm8, 1.0, %v2123_v1  ;;  %v1673_v13 = vsel %vm817_vm9, 1.0, %v2123_v1  ;;  %v1674_v20 = vsel %vm822_vm10, 1.0, %v2123_v1 }
 0x398   :  { %v810_v15 = vmul.f32 %v1671_v11, %v2253_v18  ;;  %v815_v16 = vmul.f32 %v1672_v12, %v2258_v19  ;;  %v820_v24 = vmul.f32 %v1673_v13, %v2265_v22  ;;  %v825_v27 = vmul.f32 %v1674_v20, %v2276_v26 }
 0x39a   :  { %v816_v21 = vadd.f32 %v815_v16, %v810_v15 }
 0x39c   :  { %v821_v25 = vadd.f32 %v820_v24, %v816_v21 }
 0x39e   :  { %v826_v29 = vadd.f32 %v825_v27, %v821_v25 }
 0x3a0   :  { %v828_v30 = vadd.f32 %v827_v28, %v826_v29 }
 0x3a2   :  { %2080 = vtanh.f32 %v828_v30 }
 0x3ac   :  { %v2081_v31 = vpop.eup %2080 }
 0x3ad   :  { %1908 = vmatmul.mubr.msk.f32.vlgmr.msra.gmra.mrb[8].mxu1 %vm62_vm1, %v2081_v31 }
 0x3ae   :  { %2044 = vmatpush3.bf16.msra.mxu1 %v2233_v14  ;;  %1929 = vmatprep.mubr.msk.f32.mxu1 %vm2122_vm0, %v2123_v1 }
 0x3af   :  { %2045 = vmatprep.subr.bf16.mxu1 %v2121_v0 }
 0x3b2   :  { %2047 = vmatpush3.bf16.msra.mxu1 %v2243_v17 }
 0x3b3   :  { %2054 = vmatprep.subr.bf16.mxu1 %v2121_v0 }
 0x480   :  { %v899_v41 = vpop.f32.mrb[8].mxu1 }
 0x481   :  { %v900_v42 = vadd.f32 %v2297_v45, %v899_v41  ;;  %v1909_v43 = vpop.f32.mrb[9].mxu1 }
 0x483   :  { %1676 = vst.msk [vmem:[%s2530_s6 + $0x2] sm:$0x3] %vm783_vm3, %v900_v42  ;;  %v903_v44 = vsel %vm783_vm3, %v900_v42, -inf }
 0x484   :  { %904 = vmax.xlane.f32.xlu1 %v903_v44 }
 0x511   :  { %v905_v46 = vpop.xlane.xlu1 %904 }
 0x512   :  { %vm906_vm11 = vcmp.eq.f32.partialorder %v900_v42, %v905_v46 }
 0x513   :  { %v907_v47 = vsel %vm906_vm11, %v2312_v52, 4 }
 0x514   :  { %v908_v23 = vsel %vm783_vm3, %v907_v47, 2147483647 }
 0x515   :  { %v910_v48 = vshra.s32 %v908_v23, 16  ;;  %v909_v50 = vand.u32 65535, %v908_v23 }
 0x517   :  { %v912_v49 = vcvt.s32.f32 %v910_v48  ;;  %v911_v53 = vcvt.s32.f32 %v909_v50  ;;  %v1067_v48 = vld [vmem:[#allocation2 + $0x6] sm:$0x3] }
 0x519   :  { %913 = vmin.xlane.f32.xlu0 %v912_v49 }
 0x5a6   :  { %v914_v51 = vpop.xlane.xlu0 %913 }
 0x5a7   :  { %vm915_vm12 = vcmp.eq.f32.partialorder %v912_v49, %v914_v51  ;;  %v920_v55 = vcvt.f32.s32 %v914_v51 }
 0x5a8   :  { %v916_v54 = vsel %vm915_vm12, %v911_v53, inf }
 0x5a9   :  { %917 = vmin.xlane.f32.xlu1 %v916_v54  ;;  %v921_v57 = vshll.u32 %v920_v55, 16 }
 0x636   :  { %v918_v56 = vpop.xlane.xlu1 %917 }
 0x637   :  { %v919_v58 = vcvt.f32.s32 %v918_v56 }
 0x639   :  { %v922_v59 = vadd.s32 %v921_v57, %v919_v58 }
 0x63b   :  { %1677 = vst.msk [vmem:[%s2531_s7 + $0x2] sm:$0x3] %vm805_vm6, %v922_v59  ;;  %vm927_vm13 = vcmp.eq.s32.totalorder %v922_v59, 0  ;;  %vm932_vm14 = vcmp.eq.s32.totalorder %v922_v59, 1  ;;  %vm937_vm15 = vcmp.eq.s32.totalorder %v922_v59, 2  ;;  %vm942_vm2 = vcmp.eq.s32.totalorder %v922_v59, 3 }
 0x63c   :  { %v1678_v60 = vsel %vm927_vm13, 1.0, %v2123_v1  ;;  %v1679_v61 = vsel %vm932_vm14, 1.0, %v2123_v1  ;;  %v1680_v62 = vsel %vm937_vm15, 1.0, %v2123_v1  ;;  %v1681_v3 = vsel %vm942_vm2, 1.0, %v2123_v1 }
 0x63d   :  { %v930_v63 = vmul.f32 %v1678_v60, %v2253_v18  ;;  %v935_v2 = vmul.f32 %v1679_v61, %v2258_v19  ;;  %v940_v6 = vmul.f32 %v1680_v62, %v2265_v22  ;;  %v945_v8 = vmul.f32 %v1681_v3, %v2276_v26 }
 0x63f   :  { %v936_v4 = vadd.f32 %v935_v2, %v930_v63 }
 0x641   :  { %v941_v5 = vadd.f32 %v940_v6, %v936_v4 }
 0x643   :  { %v946_v9 = vadd.f32 %v945_v8, %v941_v5 }
 0x645   :  { %v948_v10 = vadd.f32 %v947_v7, %v946_v9 }
 0x647   :  { %2082 = vtanh.f32 %v948_v10 }
 0x651   :  { %v2083_v11 = vpop.eup %2082 }
 0x652   :  { %1919 = vmatmul.mubr.msk.f32.vlgmr.msra.gmra.mrb[10].mxu0 %vm62_vm1, %v2083_v11 }
 0x653   :  { %2050 = vmatpush3.bf16.msra.mxu0 %v2233_v14  ;;  %1940 = vmatprep.mubr.msk.f32.mxu0 %vm2122_vm0, %v2123_v1 }
 0x654   :  { %2051 = vmatprep.subr.bf16.mxu0 %v2121_v0 }
 0x657   :  { %2053 = vmatpush3.bf16.msra.mxu0 %v2243_v17 }
 0x658   :  { %2060 = vmatprep.subr.bf16.mxu0 %v2121_v0 }
 0x725   :  { %v1019_v12 = vpop.f32.mrb[10].mxu0 }
 0x726   :  { %v1020_v13 = vadd.f32 %v2297_v45, %v1019_v12  ;;  %v1920_v15 = vpop.f32.mrb[11].mxu0 }
 0x728   :  { %1683 = vst.msk [vmem:[%s2530_s6 + $0x4] sm:$0x3] %vm783_vm3, %v1020_v13  ;;  %v1023_v16 = vsel %vm783_vm3, %v1020_v13, -inf }
 0x729   :  { %1024 = vmax.xlane.f32.xlu0 %v1023_v16 }
 0x7b6   :  { %v1025_v20 = vpop.xlane.xlu0 %1024 }
 0x7b7   :  { %vm1026_vm4 = vcmp.eq.f32.partialorder %v1020_v13, %v1025_v20 }
 0x7b8   :  { %v1027_v21 = vsel %vm1026_vm4, %v2312_v52, 4 }
 0x7b9   :  { %v1028_v24 = vsel %vm783_vm3, %v1027_v21, 2147483647 }
 0x7ba   :  { %v1030_v25 = vshra.s32 %v1028_v24, 16  ;;  %v1029_v28 = vand.u32 65535, %v1028_v24 }
 0x7bc   :  { %v1032_v27 = vcvt.s32.f32 %v1030_v25  ;;  %v1031_v30 = vcvt.s32.f32 %v1029_v28  ;;  %v1187_v25 = vld [vmem:[#allocation2 + $0x8] sm:$0x3] }
 0x7be   :  { %1033 = vmin.xlane.f32.xlu1 %v1032_v27 }
 0x84b   :  { %v1034_v29 = vpop.xlane.xlu1 %1033 }
 0x84c   :  { %vm1035_vm5 = vcmp.eq.f32.partialorder %v1032_v27, %v1034_v29  ;;  %v1040_v32 = vcvt.f32.s32 %v1034_v29 }
 0x84d   :  { %v1036_v31 = vsel %vm1035_vm5, %v1031_v30, inf }
 0x84e   :  { %1037 = vmin.xlane.f32.xlu0 %v1036_v31  ;;  %v1041_v34 = vshll.u32 %v1040_v32, 16 }
 0x8db   :  { %v1038_v33 = vpop.xlane.xlu0 %1037 }
 0x8dc   :  { %v1039_v35 = vcvt.f32.s32 %v1038_v33 }
 0x8de   :  { %v1042_v36 = vadd.s32 %v1041_v34, %v1039_v35 }
 0x8e0   :  { %1684 = vst.msk [vmem:[%s2531_s7 + $0x4] sm:$0x3] %vm805_vm6, %v1042_v36  ;;  %vm1047_vm7 = vcmp.eq.s32.totalorder %v1042_v36, 0  ;;  %vm1052_vm8 = vcmp.eq.s32.totalorder %v1042_v36, 1  ;;  %vm1057_vm9 = vcmp.eq.s32.totalorder %v1042_v36, 2  ;;  %vm1062_vm10 = vcmp.eq.s32.totalorder %v1042_v36, 3 }
 0x8e1   :  { %v1685_v37 = vsel %vm1047_vm7, 1.0, %v2123_v1  ;;  %v1686_v38 = vsel %vm1052_vm8, 1.0, %v2123_v1  ;;  %v1687_v39 = vsel %vm1057_vm9, 1.0, %v2123_v1  ;;  %v1688_v42 = vsel %vm1062_vm10, 1.0, %v2123_v1 }
 0x8e2   :  { %v1050_v40 = vmul.f32 %v1685_v37, %v2253_v18  ;;  %v1055_v41 = vmul.f32 %v1686_v38, %v2258_v19  ;;  %v1060_v44 = vmul.f32 %v1687_v39, %v2265_v22  ;;  %v1065_v47 = vmul.f32 %v1688_v42, %v2276_v26 }
 0x8e4   :  { %v1056_v43 = vadd.f32 %v1055_v41, %v1050_v40 }
 0x8e6   :  { %v1061_v46 = vadd.f32 %v1060_v44, %v1056_v43 }
 0x8e8   :  { %v1066_v23 = vadd.f32 %v1065_v47, %v1061_v46 }
 0x8ea   :  { %v1068_v49 = vadd.f32 %v1067_v48, %v1066_v23 }
 0x8ec   :  { %2084 = vtanh.f32 %v1068_v49 }
 0x8f6   :  { %v2085_v50 = vpop.eup %2084 }
 0x8f7   :  { %1930 = vmatmul.mubr.msk.f32.vlgmr.msra.gmra.mrb[10].mxu1 %vm62_vm1, %v2085_v50 }
 0x8f8   :  { %2056 = vmatpush3.bf16.msra.mxu1 %v2233_v14  ;;  %1951 = vmatprep.mubr.msk.f32.mxu1 %vm2122_vm0, %v2123_v1 }
 0x8f9   :  { %2057 = vmatprep.subr.bf16.mxu1 %v2121_v0 }
 0x8fc   :  { %2059 = vmatpush3.bf16.msra.mxu1 %v2243_v17 }
 0x8fd   :  { %2066 = vmatprep.subr.bf16.mxu1 %v2121_v0 }
 0x9ca   :  { %v1139_v51 = vpop.f32.mrb[10].mxu1 }
 0x9cb   :  { %v1140_v53 = vadd.f32 %v2297_v45, %v1139_v51  ;;  %v1931_v54 = vpop.f32.mrb[11].mxu1 }
 0x9cd   :  { %1690 = vst.msk [vmem:[%s2530_s6 + $0x6] sm:$0x3] %vm783_vm3, %v1140_v53  ;;  %v1143_v55 = vsel %vm783_vm3, %v1140_v53, -inf }
 0x9ce   :  { %1144 = vmax.xlane.f32.xlu1 %v1143_v55 }
 0xa5b   :  { %v1145_v56 = vpop.xlane.xlu1 %1144 }
 0xa5c   :  { %vm1146_vm11 = vcmp.eq.f32.partialorder %v1140_v53, %v1145_v56 }
 0xa5d   :  { %v1147_v57 = vsel %vm1146_vm11, %v2312_v52, 4 }
 0xa5e   :  { %v1148_v58 = vsel %vm783_vm3, %v1147_v57, 2147483647 }
 0xa5f   :  { %v1150_v59 = vshra.s32 %v1148_v58, 16  ;;  %v1149_v61 = vand.u32 65535, %v1148_v58 }
 0xa61   :  { %v1152_v60 = vcvt.s32.f32 %v1150_v59  ;;  %v1151_v63 = vcvt.s32.f32 %v1149_v61  ;;  %v1307_v59 = vld [vmem:[#allocation2 + $0xa] sm:$0x3] }
 0xa63   :  { %1153 = vmin.xlane.f32.xlu0 %v1152_v60 }
 0xaf0   :  { %v1154_v62 = vpop.xlane.xlu0 %1153 }
 0xaf1   :  { %vm1155_vm12 = vcmp.eq.f32.partialorder %v1152_v60, %v1154_v62  ;;  %v1160_v3 = vcvt.f32.s32 %v1154_v62 }
 0xaf2   :  { %v1156_v2 = vsel %vm1155_vm12, %v1151_v63, inf }
 0xaf3   :  { %1157 = vmin.xlane.f32.xlu1 %v1156_v2  ;;  %v1161_v6 = vshll.u32 %v1160_v3, 16 }
 0xb80   :  { %v1158_v4 = vpop.xlane.xlu1 %1157 }
 0xb81   :  { %v1159_v5 = vcvt.f32.s32 %v1158_v4 }
 0xb83   :  { %v1162_v8 = vadd.s32 %v1161_v6, %v1159_v5 }
 0xb85   :  { %1691 = vst.msk [vmem:[%s2531_s7 + $0x6] sm:$0x3] %vm805_vm6, %v1162_v8  ;;  %vm1167_vm13 = vcmp.eq.s32.totalorder %v1162_v8, 0  ;;  %vm1172_vm14 = vcmp.eq.s32.totalorder %v1162_v8, 1  ;;  %vm1177_vm15 = vcmp.eq.s32.totalorder %v1162_v8, 2  ;;  %vm1182_vm2 = vcmp.eq.s32.totalorder %v1162_v8, 3 }
 0xb86   :  { %v1692_v9 = vsel %vm1167_vm13, 1.0, %v2123_v1  ;;  %v1693_v7 = vsel %vm1172_vm14, 1.0, %v2123_v1  ;;  %v1694_v10 = vsel %vm1177_vm15, 1.0, %v2123_v1  ;;  %v1695_v13 = vsel %vm1182_vm2, 1.0, %v2123_v1 }
 0xb87   :  { %v1170_v11 = vmul.f32 %v1692_v9, %v2253_v18  ;;  %v1175_v12 = vmul.f32 %v1693_v7, %v2258_v19  ;;  %v1180_v16 = vmul.f32 %v1694_v10, %v2265_v22  ;;  %v1185_v21 = vmul.f32 %v1695_v13, %v2276_v26 }
 0xb89   :  { %v1176_v15 = vadd.f32 %v1175_v12, %v1170_v11 }
 0xb8b   :  { %v1181_v20 = vadd.f32 %v1180_v16, %v1176_v15 }
 0xb8d   :  { %v1186_v24 = vadd.f32 %v1185_v21, %v1181_v20 }
 0xb8f   :  { %v1188_v27 = vadd.f32 %v1187_v25, %v1186_v24 }
 0xb91   :  { %2086 = vtanh.f32 %v1188_v27 }
 0xb9b   :  { %v2087_v28 = vpop.eup %2086 }
 0xb9c   :  { %1941 = vmatmul.mubr.msk.f32.vlgmr.msra.gmra.mrb[12].mxu0 %vm62_vm1, %v2087_v28 }
 0xb9d   :  { %2062 = vmatpush3.bf16.msra.mxu0 %v2233_v14  ;;  %1962 = vmatprep.mubr.msk.f32.mxu0 %vm2122_vm0, %v2123_v1 }
 0xb9e   :  { %2063 = vmatprep.subr.bf16.mxu0 %v2121_v0 }
 0xba1   :  { %2065 = vmatpush3.bf16.msra.mxu0 %v2243_v17 }
 0xc6f   :  { %v1259_v29 = vpop.f32.mrb[12].mxu0 }
 0xc70   :  { %v1260_v30 = vadd.f32 %v2297_v45, %v1259_v29  ;;  %v1942_v31 = vpop.f32.mrb[13].mxu0 }
 0xc72   :  { %1697 = vst.msk [vmem:[%s2530_s6 + $0x8] sm:$0x3] %vm783_vm3, %v1260_v30  ;;  %v1263_v32 = vsel %vm783_vm3, %v1260_v30, -inf }
 0xc73   :  { %1264 = vmax.xlane.f32.xlu0 %v1263_v32 }
 0xd00   :  { %v1265_v33 = vpop.xlane.xlu0 %1264 }
 0xd01   :  { %vm1266_vm4 = vcmp.eq.f32.partialorder %v1260_v30, %v1265_v33  ;;  %v1427_v33 = vld [vmem:[#allocation2 + $0xc] sm:$0x3] }
 0xd02   :  { %v1267_v34 = vsel %vm1266_vm4, %v2312_v52, 4 }
 0xd03   :  { %v1268_v35 = vsel %vm783_vm3, %v1267_v34, 2147483647 }
 0xd04   :  { %v1270_v36 = vshra.s32 %v1268_v35, 16  ;;  %v1269_v38 = vand.u32 65535, %v1268_v35 }
 0xd06   :  { %v1272_v37 = vcvt.s32.f32 %v1270_v36  ;;  %v1271_v40 = vcvt.s32.f32 %v1269_v38 }
 0xd08   :  { %1273 = vmin.xlane.f32.xlu1 %v1272_v37 }
 0xd95   :  { %v1274_v39 = vpop.xlane.xlu1 %1273 }
 0xd96   :  { %vm1275_vm5 = vcmp.eq.f32.partialorder %v1272_v37, %v1274_v39  ;;  %v1280_v42 = vcvt.f32.s32 %v1274_v39 }
 0xd97   :  { %v1276_v41 = vsel %vm1275_vm5, %v1271_v40, inf }
 0xd98   :  { %1277 = vmin.xlane.f32.xlu0 %v1276_v41  ;;  %v1281_v44 = vshll.u32 %v1280_v42, 16 }
 0xe25   :  { %v1278_v43 = vpop.xlane.xlu0 %1277 }
 0xe26   :  { %v1279_v46 = vcvt.f32.s32 %v1278_v43 }
 0xe28   :  { %v1282_v47 = vadd.s32 %v1281_v44, %v1279_v46 }
 0xe2a   :  { %1698 = vst.msk [vmem:[%s2531_s7 + $0x8] sm:$0x3] %vm805_vm6, %v1282_v47  ;;  %vm1287_vm7 = vcmp.eq.s32.totalorder %v1282_v47, 0  ;;  %vm1292_vm8 = vcmp.eq.s32.totalorder %v1282_v47, 1  ;;  %vm1297_vm9 = vcmp.eq.s32.totalorder %v1282_v47, 2  ;;  %vm1302_vm10 = vcmp.eq.s32.totalorder %v1282_v47, 3 }
 0xe2b   :  { %v1699_v23 = vsel %vm1287_vm7, 1.0, %v2123_v1  ;;  %v1700_v48 = vsel %vm1292_vm8, 1.0, %v2123_v1  ;;  %v1701_v49 = vsel %vm1297_vm9, 1.0, %v2123_v1  ;;  %v1702_v53 = vsel %vm1302_vm10, 1.0, %v2123_v1 }
 0xe2c   :  { %v1290_v50 = vmul.f32 %v1699_v23, %v2253_v18  ;;  %v1295_v51 = vmul.f32 %v1700_v48, %v2258_v19  ;;  %v1300_v55 = vmul.f32 %v1701_v49, %v2265_v22  ;;  %v1305_v57 = vmul.f32 %v1702_v53, %v2276_v26 }
 0xe2e   :  { %v1296_v54 = vadd.f32 %v1295_v51, %v1290_v50 }
 0xe30   :  { %v1301_v56 = vadd.f32 %v1300_v55, %v1296_v54 }
 0xe32   :  { %v1306_v58 = vadd.f32 %v1305_v57, %v1301_v56 }
 0xe34   :  { %v1308_v60 = vadd.f32 %v1307_v59, %v1306_v58 }
 0xe36   :  { %2088 = vtanh.f32 %v1308_v60 }
 0xe40   :  { %v2089_v61 = vpop.eup %2088 }
 0xe41   :  { %1952 = vmatmul.mubr.msk.f32.vlgmr.msra.gmra.mrb[12].mxu1 %vm62_vm1, %v2089_v61 }
 0xe42   :  { %2068 = vmatpush3.bf16.msra.mxu1 %v2233_v14  ;;  %1973 = vmatprep.mubr.msk.f32.mxu1 %vm2122_vm0, %v2123_v1 }
 0xe43   :  { %2069 = vmatprep.subr.bf16.mxu1 %v2121_v0 }
 0xe46   :  { %2071 = vmatpush3.bf16.msra.mxu1 %v2243_v17 }
 0xf14   :  { %v1379_v62 = vpop.f32.mrb[12].mxu1 }
 0xf15   :  { %v1380_v63 = vadd.f32 %v2297_v45, %v1379_v62  ;;  %v1953_v2 = vpop.f32.mrb[13].mxu1 }
 0xf17   :  { %1704 = vst.msk [vmem:[%s2530_s6 + $0xa] sm:$0x3] %vm783_vm3, %v1380_v63  ;;  %v1383_v3 = vsel %vm783_vm3, %v1380_v63, -inf }
 0xf18   :  { %1384 = vmax.xlane.f32.xlu1 %v1383_v3 }
 0xfa5   :  { %v1385_v14 = vpop.xlane.xlu1 %1384 }
 0xfa6   :  { %vm1386_vm11 = vcmp.eq.f32.partialorder %v1380_v63, %v1385_v14  ;;  %v1547_v14 = vld [vmem:[#allocation2 + $0xe] sm:$0x3] }
 0xfa7   :  { %v1387_v4 = vsel %vm1386_vm11, %v2312_v52, 4 }
 0xfa8   :  { %v1388_v0 = vsel %vm783_vm3, %v1387_v4, 2147483647 }
 0xfa9   :  { %v1390_v6 = vshra.s32 %v1388_v0, 16  ;;  %v1389_v5 = vand.u32 65535, %v1388_v0 }
 0xfab   :  { %v1392_v17 = vcvt.s32.f32 %v1390_v6  ;;  %v1391_v9 = vcvt.s32.f32 %v1389_v5 }
 0xfad   :  { %1393 = vmin.xlane.f32.xlu0 %v1392_v17 }
0x103a   :  { %v1394_v8 = vpop.xlane.xlu0 %1393 }
0x103b   :  { %vm1395_vm0 = vcmp.eq.f32.partialorder %v1392_v17, %v1394_v8  ;;  %v1400_v10 = vcvt.f32.s32 %v1394_v8 }
0x103c   :  { %v1396_v7 = vsel %vm1395_vm0, %v1391_v9, inf }
0x103d   :  { %1397 = vmin.xlane.f32.xlu1 %v1396_v7  ;;  %v1401_v12 = vshll.u32 %v1400_v10, 16 }
0x10ca   :  { %v1398_v11 = vpop.xlane.xlu1 %1397 }
0x10cb   :  { %v1399_v13 = vcvt.f32.s32 %v1398_v11 }
0x10cd   :  { %v1402_v15 = vadd.s32 %v1401_v12, %v1399_v13 }
0x10cf   :  { %1705 = vst.msk [vmem:[%s2531_s7 + $0xa] sm:$0x3] %vm805_vm6, %v1402_v15  ;;  %vm1407_vm12 = vcmp.eq.s32.totalorder %v1402_v15, 0  ;;  %vm1412_vm13 = vcmp.eq.s32.totalorder %v1402_v15, 1  ;;  %vm1417_vm14 = vcmp.eq.s32.totalorder %v1402_v15, 2  ;;  %vm1422_vm15 = vcmp.eq.s32.totalorder %v1402_v15, 3 }
0x10d0   :  { %v1706_v16 = vsel %vm1407_vm12, 1.0, %v2123_v1  ;;  %v1707_v20 = vsel %vm1412_vm13, 1.0, %v2123_v1  ;;  %v1708_v21 = vsel %vm1417_vm14, 1.0, %v2123_v1  ;;  %v1709_v27 = vsel %vm1422_vm15, 1.0, %v2123_v1 }
0x10d1   :  { %v1410_v24 = vmul.f32 %v1706_v16, %v2253_v18  ;;  %v1415_v25 = vmul.f32 %v1707_v20, %v2258_v19  ;;  %v1420_v29 = vmul.f32 %v1708_v21, %v2265_v22  ;;  %v1425_v31 = vmul.f32 %v1709_v27, %v2276_v26 }
0x10d3   :  { %v1416_v28 = vadd.f32 %v1415_v25, %v1410_v24 }
0x10d5   :  { %v1421_v30 = vadd.f32 %v1420_v29, %v1416_v28 }
0x10d7   :  { %v1426_v32 = vadd.f32 %v1425_v31, %v1421_v30 }
0x10d9   :  { %v1428_v34 = vadd.f32 %v1427_v33, %v1426_v32 }
0x10db   :  { %2090 = vtanh.f32 %v1428_v34 }
0x10e5   :  { %v2091_v35 = vpop.eup %2090 }
0x10e6   :  { %1963 = vmatmul.mubr.msk.f32.vlgmr.msra.gmra.mrb[14].mxu0 %vm62_vm1, %v2091_v35 }
0x11b9   :  { %v1499_v36 = vpop.f32.mrb[14].mxu0 }
0x11ba   :  { %v1500_v37 = vadd.f32 %v2297_v45, %v1499_v36  ;;  %v1964_v38 = vpop.f32.mrb[15].mxu0 }
0x11bc   :  { %1711 = vst.msk [vmem:[%s2530_s6 + $0xc] sm:$0x3] %vm783_vm3, %v1500_v37  ;;  %v1503_v39 = vsel %vm783_vm3, %v1500_v37, -inf }
0x11bd   :  { %1504 = vmax.xlane.f32.xlu0 %v1503_v39 }
0x124a   :  { %v1505_v40 = vpop.xlane.xlu0 %1504 }
0x124b   :  { %vm1506_vm2 = vcmp.eq.f32.partialorder %v1500_v37, %v1505_v40 }
0x124c   :  { %v1507_v41 = vsel %vm1506_vm2, %v2312_v52, 4 }
0x124d   :  { %v1508_v42 = vsel %vm783_vm3, %v1507_v41, 2147483647 }
0x124e   :  { %v1510_v43 = vshra.s32 %v1508_v42, 16  ;;  %v1509_v46 = vand.u32 65535, %v1508_v42 }
0x1250   :  { %v1512_v44 = vcvt.s32.f32 %v1510_v43  ;;  %v1511_v23 = vcvt.s32.f32 %v1509_v46 }
0x1252   :  { %1513 = vmin.xlane.f32.xlu1 %v1512_v44 }
0x12df   :  { %v1514_v47 = vpop.xlane.xlu1 %1513 }
0x12e0   :  { %vm1515_vm4 = vcmp.eq.f32.partialorder %v1512_v44, %v1514_v47  ;;  %v1520_v49 = vcvt.f32.s32 %v1514_v47 }
0x12e1   :  { %v1516_v48 = vsel %vm1515_vm4, %v1511_v23, inf }
0x12e2   :  { %1517 = vmin.xlane.f32.xlu0 %v1516_v48  ;;  %v1521_v51 = vshll.u32 %v1520_v49, 16 }
0x136f   :  { %v1518_v50 = vpop.xlane.xlu0 %1517 }
0x1370   :  { %v1519_v53 = vcvt.f32.s32 %v1518_v50 }
0x1372   :  { %v1522_v54 = vadd.s32 %v1521_v51, %v1519_v53 }
0x1374   :  { %1712 = vst.msk [vmem:[%s2531_s7 + $0xc] sm:$0x3] %vm805_vm6, %v1522_v54  ;;  %vm1527_vm5 = vcmp.eq.s32.totalorder %v1522_v54, 0  ;;  %vm1532_vm7 = vcmp.eq.s32.totalorder %v1522_v54, 1  ;;  %vm1537_vm8 = vcmp.eq.s32.totalorder %v1522_v54, 2  ;;  %vm1542_vm9 = vcmp.eq.s32.totalorder %v1522_v54, 3 }
0x1375   :  { %v1713_v55 = vsel %vm1527_vm5, 1.0, %v2123_v1  ;;  %v1714_v56 = vsel %vm1532_vm7, 1.0, %v2123_v1  ;;  %v1715_v57 = vsel %vm1537_vm8, 1.0, %v2123_v1  ;;  %v1716_v60 = vsel %vm1542_vm9, 1.0, %v2123_v1 }
0x1376   :  { %v1530_v58 = vmul.f32 %v1713_v55, %v2253_v18  ;;  %v1535_v59 = vmul.f32 %v1714_v56, %v2258_v19  ;;  %v1540_v62 = vmul.f32 %v1715_v57, %v2265_v22  ;;  %v1545_v2 = vmul.f32 %v1716_v60, %v2276_v26 }
0x1378   :  { %v1536_v61 = vadd.f32 %v1535_v59, %v1530_v58 }
0x137a   :  { %v1541_v63 = vadd.f32 %v1540_v62, %v1536_v61 }
0x137c   :  { %v1546_v3 = vadd.f32 %v1545_v2, %v1541_v63 }
0x137e   :  { %v1548_v4 = vadd.f32 %v1547_v14, %v1546_v3 }
0x1380   :  { %2092 = vtanh.f32 %v1548_v4 }
0x138a   :  { %v2093_v0 = vpop.eup %2092 }
0x138b   :  { %1974 = vmatmul.mubr.msk.f32.vlgmr.msra.gmra.mrb[14].mxu1 %vm62_vm1, %v2093_v0 }
0x145e   :  { %v1619_v6 = vpop.f32.mrb[14].mxu1 }
0x145f   :  { %v1620_v18 = vadd.f32 %v2297_v45, %v1619_v6  ;;  %v1975_v17 = vpop.f32.mrb[15].mxu1 }
0x1461   :  { %1718 = vst.msk [vmem:[%s2530_s6 + $0xe] sm:$0x3] %vm783_vm3, %v1620_v18  ;;  %v1623_v1 = vsel %vm783_vm3, %v1620_v18, -inf }
0x1462   :  { %1624 = vmax.xlane.f32.xlu1 %v1623_v1 }
0x14ef   :  { %v1625_v19 = vpop.xlane.xlu1 %1624 }
0x14f0   :  { %vm1626_vm10 = vcmp.eq.f32.partialorder %v1620_v18, %v1625_v19 }
0x14f1   :  { %v1627_v22 = vsel %vm1626_vm10, %v2312_v52, 4 }
0x14f2   :  { %v1628_v26 = vsel %vm783_vm3, %v1627_v22, 2147483647 }
0x14f3   :  { %v1630_v5 = vshra.s32 %v1628_v26, 16  ;;  %v1629_v9 = vand.u32 65535, %v1628_v26 }
0x14f5   :  { %v1632_v8 = vcvt.s32.f32 %v1630_v5  ;;  %v1631_v7 = vcvt.s32.f32 %v1629_v9 }
0x14f7   :  { %1633 = vmin.xlane.f32.xlu0 %v1632_v8 }
0x1584   :  { %v1634_v45 = vpop.xlane.xlu0 %1633 }
0x1585   :  { %vm1635_vm1 = vcmp.eq.f32.partialorder %v1632_v8, %v1634_v45  ;;  %v1640_v11 = vcvt.f32.s32 %v1634_v45 }
0x1586   :  { %v1636_v10 = vsel %vm1635_vm1, %v1631_v7, inf }
0x1587   :  { %1637 = vmin.xlane.f32.xlu1 %v1636_v10  ;;  %v1641_v13 = vshll.u32 %v1640_v11, 16 }
0x1614   :  { %v1638_v12 = vpop.xlane.xlu1 %1637 }
0x1615   :  { %v1639_v15 = vcvt.f32.s32 %v1638_v12 }
0x1617   :  { %v1642_v16 = vadd.s32 %v1641_v13, %v1639_v15 }
0x1619   :  { %1719 = vst.msk [vmem:[%s2531_s7 + $0xe] sm:$0x3] %vm805_vm6, %v1642_v16 }
0x161a   :  { %1655 = vsyncpa [#allocation4], 1 }

</bundles_post_ra>
